<compile_context>
chip_gen: v6e
topology: v6e:2x2x1
jax: 0.10.0
libtpu: 0.0.40
codegen_flags: <defaults>
</compile_context>

<pallas_src>
import jax
import jax.numpy as jnp
from jax import lax
from jax.experimental import pallas as pl
from jax.experimental.pallas import tpu as pltpu


# --------------------------------- kernel ---------------------------------
def _blstmp_chunk_kernel(x_ref, wx_ref, b_ref, wr_ref, wlf_ref, wlb_ref, bl_ref,
                         outf_ref, outb_ref,
                         px_ref, hf_ref, hb_ref, h2_ref, c2_ref):
    # x_ref  : (Tc, Bp, 2F)  chunk of x_cat (fwd features | time-reversed features)
    # wx_ref : (2F, 8H) fused input weights, gate-major/direction-minor columns
    # b_ref  : (1, 8H) fused biases (same column order)
    # wr_ref : (2H, 8H) block-diagonal recurrent weights ([hf|hb] rows)
    # wl*_ref: (H, 2P) per-direction output-projection weights, bl_ref: (1, 2P)
    # outf_ref / outb_ref: (Tc, Bp, 2P) per-direction output partials
    # px_ref : (Tc, Bp, 8H) gate pre-activations, hf/hb_ref: (Tc, Bp, H)
    # h2_ref / c2_ref: (Bp, 2H) carries, persist across grid steps
    Tc, Bp, F2 = x_ref.shape
    H = wlf_ref.shape[0]
    H2, H6, H8 = 2 * H, 6 * H, 8 * H

    @pl.when(pl.program_id(0) == 0)
    def _init():
        h2_ref[...] = jnp.zeros_like(h2_ref)
        c2_ref[...] = jnp.zeros_like(c2_ref)

    # ---- fused input projection: ONE MXU matmul for both directions -------
    # (backward time-reversal already baked into x_cat / the column placement)
    px = jnp.dot(x_ref[...].reshape(Tc * Bp, F2), wx_ref[...],
                 preferred_element_type=jnp.float32) + b_ref[...]
    px_ref[...] = px.reshape(Tc, Bp, H8)

    wr = wr_ref[...]          # hoisted out of the loop

    # ---- merged fwd+bwd recurrence: ONE matmul + 3 EUP pushes per step -----
    def body(s, carry):
        h2, c2 = carry
        g = px_ref[s] + jnp.dot(h2, wr, preferred_element_type=jnp.float32)  # (Bp, 8H)
        # columns: [i_f,i_b | f_f,f_b | o_f,o_b | g_f,g_b]
        sg = 0.5 * jnp.tanh(0.5 * g[:, :H6]) + 0.5      # sigmoid slab: i,f,o both dirs
        gg = jnp.tanh(g[:, H6:])                        # (Bp, 2H) cell candidates
        c2 = sg[:, H2:2 * H2] * c2 + sg[:, :H2] * gg    # f*c + i*g
        h2 = sg[:, 2 * H2:3 * H2] * jnp.tanh(c2)        # o*tanh(c)
        hf_ref[s] = h2[:, :H]
        hb_ref[Tc - 1 - s] = h2[:, H:]
        return (h2, c2)

    h2, c2 = lax.fori_loop(0, Tc, body, (h2_ref[...], c2_ref[...]), unroll=4)
    h2_ref[...] = h2
    c2_ref[...] = c2

    # ---- per-direction output partials (summed in the wrapper) -------------
    outf = jnp.dot(hf_ref[...].reshape(Tc * Bp, H), wlf_ref[...],
                   preferred_element_type=jnp.float32) + bl_ref[...]
    outb = jnp.dot(hb_ref[...].reshape(Tc * Bp, H), wlb_ref[...],
                   preferred_element_type=jnp.float32)
    outf_ref[...] = outf.reshape(Tc, Bp, -1).astype(outf_ref.dtype)
    outb_ref[...] = outb.reshape(Tc, Bp, -1).astype(outb_ref.dtype)


# ------------------------------ sizing helpers ------------------------------
def _pick_chunk_t(T, Bp, F2, H, P2, target_bytes=2 << 20):
    """Largest divisor of T whose per-chunk working set stays under target."""
    per_t = Bp * (F2 + 8 * H + 2 * H + 4 * P2) * 4
    cap = max(1, min(T, target_bytes // max(per_t, 1)))
    for tc in range(cap, 0, -1):
        if T % tc == 0:
            return tc
    return 1


def _vmem_limit_bytes(Tc, Bp, F2, H, P2):
    f32 = 4
    blocks = 2 * Tc * Bp * (F2 + 2 * P2) * f32                        # double-buffered x / out chunks
    weights = 2 * (F2 * 8 * H + 8 * H + 2 * H * 8 * H + 2 * H * P2 + P2) * f32
    scratch = (Tc * Bp * (8 * H + 2 * H) + 4 * Bp * H) * f32
    need = blocks + weights + scratch + (4 << 20)                     # compiler-temp margin
    try:
        cap = int(pltpu.get_tpu_info().vmem_capacity_bytes) * 3 // 4  # generation aware (<< v7x 64 MiB)
    except Exception:  # pragma: no cover - fallback if query unsupported
        cap = 48 << 20
    return int(min(cap, max(32 << 20, need)))


# --------------------------------- wrapper ---------------------------------
def blstmp_layer(x_btf, layer_params, chunk_t=None):
    """One biLSTM + Linear layer. x_btf: (B, T, F) batch_first -> (B, T, 2P)."""
    wx_big, b_big, w_rec, wl_f, wl_b, bl = layer_params
    B, T, F = x_btf.shape
    H = wl_f.shape[0]
    P2 = wl_f.shape[1]
    F2 = wx_big.shape[0]
    assert F2 == 2 * F

    # Pad batch to a multiple of 8 (sublane alignment) and go time-major.
    Bp = ((B + 7) // 8) * 8
    x_tbf = jnp.swapaxes(x_btf, 0, 1).astype(jnp.float32)
    if Bp != B:
        x_tbf = jnp.pad(x_tbf, ((0, 0), (0, Bp - B), (0, 0)))
    # x_cat[t] = [x[t], x[T-1-t]] so the bwd input projection is time-aligned.
    x_cat = jnp.concatenate([x_tbf, x_tbf[::-1]], axis=-1)            # (T, Bp, 2F)

    Tc = chunk_t if chunk_t is not None else _pick_chunk_t(T, Bp, F2, H, P2)
    assert T % Tc == 0, (T, Tc)
    nc = T // Tc

    out_f, out_b = pl.pallas_call(
        _blstmp_chunk_kernel,
        grid=(nc,),
        out_shape=(jax.ShapeDtypeStruct((T, Bp, P2), jnp.float32),
                   jax.ShapeDtypeStruct((T, Bp, P2), jnp.float32)),
        in_specs=[
            pl.BlockSpec((Tc, Bp, F2), lambda i: (i, 0, 0)),
            pl.BlockSpec(wx_big.shape, lambda i: (0, 0)),
            pl.BlockSpec(b_big.shape, lambda i: (0, 0)),
            pl.BlockSpec(w_rec.shape, lambda i: (0, 0)),
            pl.BlockSpec(wl_f.shape, lambda i: (0, 0)),
            pl.BlockSpec(wl_b.shape, lambda i: (0, 0)),
            pl.BlockSpec(bl.shape, lambda i: (0, 0)),
        ],
        out_specs=(pl.BlockSpec((Tc, Bp, P2), lambda i: (i, 0, 0)),
                   pl.BlockSpec((Tc, Bp, P2), lambda i: (nc - 1 - i, 0, 0))),
        scratch_shapes=[
            pltpu.VMEM((Tc, Bp, 8 * H), jnp.float32),   # px (both directions)
            pltpu.VMEM((Tc, Bp, H), jnp.float32),       # hf chunk
            pltpu.VMEM((Tc, Bp, H), jnp.float32),       # hb chunk
            pltpu.VMEM((Bp, 2 * H), jnp.float32),       # h carry [hf|hb]
            pltpu.VMEM((Bp, 2 * H), jnp.float32),       # c carry [cf|cb]
        ],
        compiler_params=pltpu.CompilerParams(
            dimension_semantics=("arbitrary",),
            vmem_limit_bytes=_vmem_limit_bytes(Tc, Bp, F2, H, P2)),
    )(x_cat, wx_big, b_big, w_rec, wl_f, wl_b, bl)

    out = out_f + out_b                                 # bias already in out_f
    return jnp.swapaxes(out[:, :B, :], 0, 1)            # strip pad, back to batch_first


def blstmp_forward(x, params, chunk_t=None):
    out = x
    for p in params:
        out = blstmp_layer(out, p, chunk_t=chunk_t)
    return out


# ----------------------- pure-JAX reference (for checking) -----------------------
def _ref_layer(x, raw):
    (w_ih_f, w_hh_f, b_ih_f, b_hh_f,
     w_ih_b, w_hh_b, b_ih_b, b_hh_b, w_lin, b_lin) = raw
    B, T, F = x.shape
    H = w_hh_f.shape[1]

    def run(x_tbf, w_ih, w_hh, b_ih, b_hh, reverse):
        gx = jnp.einsum('tbf,gf->tbg', x_tbf, w_ih) + b_ih + b_hh     # (T,B,4H)

        def cell(carry, g_t):
            h, c = carry
            g = g_t + h @ w_hh.T
            i = jax.nn.sigmoid(g[:, 0:H])
            f = jax.nn.sigmoid(g[:, H:2 * H])
            gg = jnp.tanh(g[:, 2 * H:3 * H])
            o = jax.nn.sigmoid(g[:, 3 * H:4 * H])
            c = f * c + i * gg
            h = o * jnp.tanh(c)
            return (h, c), h

        init = (jnp.zeros((B, H), jnp.float32), jnp.zeros((B, H), jnp.float32))
        _, hs = lax.scan(cell, init, gx, reverse=reverse)
        return hs                                                     # (T,B,H)

    x_tbf = jnp.swapaxes(x, 0, 1).astype(jnp.float32)
    hf = run(x_tbf, w_ih_f, w_hh_f, b_ih_f, b_hh_f, False)
    hb = run(x_tbf, w_ih_b, w_hh_b, b_ih_b, b_hh_b, True)
    h = jnp.concatenate([hf, hb], axis=-1)                            # (T,B,2H)
    out = jnp.einsum('tbh,ph->tbp', h, w_lin) + b_lin
    return jnp.swapaxes(out, 0, 1)


def _ref_forward(x, raw_params):
    out = x
    for raw in raw_params:
        out = _ref_layer(out, raw)
    return out


# --------------------------------- parameter init --------------------------------
def make_params(key, n_in, n_hidden, nproj, num_layers):
    """Deterministic init mimicking PyTorch shapes; weights pre-fused for the kernel.

    Returns (kernel_params, raw_params)."""
    H = n_hidden
    kernel_params, raw_params = [], []
    in_dim = n_in
    k_lstm = 1.0 / (n_hidden ** 0.5)
    k_lin = 1.0 / ((2 * n_hidden) ** 0.5)

    def u(k_, shape, scale):
        return jax.random.uniform(k_, shape, jnp.float32, -scale, scale)

    def reorder(w):   # (..., 4H) in PyTorch order [i,f,g,o] -> [i,f,o,g]
        return jnp.concatenate([w[..., 0:H], w[..., H:2 * H],
                                w[..., 3 * H:4 * H], w[..., 2 * H:3 * H]], axis=-1)

    def interleave(wf, wb):   # two (...,4H) [i,f,o,g] -> (...,8H) gate-major/dir-minor
        parts = []
        for k in range(4):
            parts.append(wf[..., k * H:(k + 1) * H])
            parts.append(wb[..., k * H:(k + 1) * H])
        return jnp.concatenate(parts, axis=-1)

    for _ in range(num_layers):
        keys = jax.random.split(key, 11)
        key = keys[0]
        w_ih_f = u(keys[1], (4 * H, in_dim), k_lstm)
        w_hh_f = u(keys[2], (4 * H, H), k_lstm)
        b_ih_f = u(keys[3], (4 * H,), k_lstm)
        b_hh_f = u(keys[4], (4 * H,), k_lstm)
        w_ih_b = u(keys[5], (4 * H, in_dim), k_lstm)
        w_hh_b = u(keys[6], (4 * H, H), k_lstm)
        b_ih_b = u(keys[7], (4 * H,), k_lstm)
        b_hh_b = u(keys[8], (4 * H,), k_lstm)
        w_lin = u(keys[9], (2 * nproj, 2 * H), k_lin)
        b_lin = u(keys[10], (2 * nproj,), k_lin)

        # fused input weights: rows [x(t) features | x(T-1-t) features]
        wxf = reorder(w_ih_f.T)                       # (F, 4H)
        wxb = reorder(w_ih_b.T)
        wx_big = jnp.concatenate([interleave(wxf, jnp.zeros_like(wxb)),
                                  interleave(jnp.zeros_like(wxf), wxb)], axis=0)  # (2F, 8H)
        # block-diagonal recurrent weights: rows [hf | hb]
        whf = reorder(w_hh_f.T)                       # (H, 4H)
        whb = reorder(w_hh_b.T)
        w_rec = jnp.concatenate([interleave(whf, jnp.zeros_like(whb)),
                                 interleave(jnp.zeros_like(whf), whb)], axis=0)   # (2H, 8H)
        bf = reorder((b_ih_f + b_hh_f)[None, :])
        bb = reorder((b_ih_b + b_hh_b)[None, :])
        b_big = interleave(bf, bb)                    # (1, 8H)
        wl = w_lin.T                                  # (2H, 2P), rows [hf | hb]

        kernel_params.append((wx_big, b_big, w_rec, wl[:H], wl[H:],
                              b_lin.reshape(1, -1)))
        raw_params.append((w_ih_f, w_hh_f, b_ih_f, b_hh_f,
                           w_ih_b, w_hh_b, b_ih_b, b_hh_b, w_lin, b_lin))
        in_dim = 2 * nproj
    return kernel_params, raw_params


if __name__ == "__main__":
    B, T = 2, 8
    n_in, n_hidden, nproj, num_layers = 32, 32, 16, 2

    kparams, rparams = make_params(jax.random.PRNGKey(0), n_in, n_hidden, nproj, num_layers)
    feature = jax.random.normal(jax.random.PRNGKey(42), (B, T, n_in), jnp.float32)

    # chunk_t=4 -> a 2-step grid per layer (exercises the pipelined / carried path).
    out = jax.block_until_ready(blstmp_forward(feature, kparams, chunk_t=4))
    ref = jax.block_until_ready(_ref_forward(feature, rparams))

    assert out.shape == (B, T, 2 * nproj), out.shape
    max_err = float(jnp.max(jnp.abs(out - ref)))
    assert max_err < 1e-4, f"mismatch vs reference: {max_err}"
    print("KERNEL_OK")
</pallas_src>

<mosaic_0001>
module attributes {stable_mosaic.version = 11 : i64} {
  func.func @_blstmp_chunk_kernel(%arg0: i32, %arg1: memref<4x8x64xf32, #tpu.memory_space<vmem>>, %arg2: memref<64x256xf32, #tpu.memory_space<vmem>>, %arg3: memref<1x256xf32, #tpu.memory_space<vmem>>, %arg4: memref<64x256xf32, #tpu.memory_space<vmem>>, %arg5: memref<32x32xf32, #tpu.memory_space<vmem>>, %arg6: memref<32x32xf32, #tpu.memory_space<vmem>>, %arg7: memref<1x32xf32, #tpu.memory_space<vmem>>, %arg8: memref<4x8x32xf32, #tpu.memory_space<vmem>>, %arg9: memref<4x8x32xf32, #tpu.memory_space<vmem>>, %arg10: memref<4x8x256xf32, #tpu.memory_space<vmem>>, %arg11: memref<4x8x32xf32, #tpu.memory_space<vmem>>, %arg12: memref<4x8x32xf32, #tpu.memory_space<vmem>>, %arg13: memref<8x64xf32, #tpu.memory_space<vmem>>, %arg14: memref<8x64xf32, #tpu.memory_space<vmem>>) attributes {dimension_semantics = [#tpu.dimension_semantics<arbitrary>], iteration_bounds = array<i64: 2>, scalar_prefetch = 0 : i64, scratch_operands = 5 : i64, tpu.core_type = #tpu.core_type<tc>, window_params = [{transform_indices = @transform_0, window_bounds = array<i64: 4, 8, 64>}, {pipeline_mode = #tpu.pipeline_mode<synchronous>, transform_indices = @transform_1, window_bounds = array<i64: 64, 256>}, {pipeline_mode = #tpu.pipeline_mode<synchronous>, transform_indices = @transform_2, window_bounds = array<i64: 1, 256>}, {pipeline_mode = #tpu.pipeline_mode<synchronous>, transform_indices = @transform_3, window_bounds = array<i64: 64, 256>}, {pipeline_mode = #tpu.pipeline_mode<synchronous>, transform_indices = @transform_4, window_bounds = array<i64: 32, 32>}, {pipeline_mode = #tpu.pipeline_mode<synchronous>, transform_indices = @transform_5, window_bounds = array<i64: 32, 32>}, {pipeline_mode = #tpu.pipeline_mode<synchronous>, transform_indices = @transform_6, window_bounds = array<i64: 1, 32>}, {transform_indices = @transform_7, window_bounds = array<i64: 4, 8, 32>}, {transform_indices = @transform_8, window_bounds = array<i64: 4, 8, 32>}]} {
    %c0_i32 = arith.constant 0 : i32
    %0 = arith.cmpi eq, %arg0, %c0_i32 : i32
    %1 = arith.extui %0 : i1 to i32
    %c0_i32_0 = arith.constant 0 : i32
    %2 = arith.cmpi ne, %1, %c0_i32_0 : i32
    scf.if %2 {
      %cst_85 = arith.constant 0.000000e+00 : f32
      %168 = vector.broadcast %cst_85 : f32 to vector<8x64xf32>
      %c0_86 = arith.constant 0 : index
      %c0_87 = arith.constant 0 : index
      %169 = vector.load %arg13[%c0_86, %c0_87] : memref<8x64xf32, #tpu.memory_space<vmem>>, vector<8x64xf32>
      tpu.vector_store %arg13[%c0_86, %c0_87], %168 {strides = array<i32>} : memref<8x64xf32, #tpu.memory_space<vmem>>, vector<8x64xf32>,
      %cst_88 = arith.constant 0.000000e+00 : f32
      %170 = vector.broadcast %cst_88 : f32 to vector<8x64xf32>
      %c0_89 = arith.constant 0 : index
      %c0_90 = arith.constant 0 : index
      %171 = vector.load %arg14[%c0_89, %c0_90] : memref<8x64xf32, #tpu.memory_space<vmem>>, vector<8x64xf32>
      tpu.vector_store %arg14[%c0_89, %c0_90], %170 {strides = array<i32>} : memref<8x64xf32, #tpu.memory_space<vmem>>, vector<8x64xf32>,
    } else {
    }
    %c0 = arith.constant 0 : index
    %c0_1 = arith.constant 0 : index
    %c0_2 = arith.constant 0 : index
    %3 = vector.load %arg1[%c0, %c0_1, %c0_2] : memref<4x8x64xf32, #tpu.memory_space<vmem>>, vector<4x8x64xf32>
    %4 = vector.shape_cast %3 : vector<4x8x64xf32> to vector<32x64xf32>
    %c0_3 = arith.constant 0 : index
    %c0_4 = arith.constant 0 : index
    %5 = vector.load %arg2[%c0_3, %c0_4] : memref<64x256xf32, #tpu.memory_space<vmem>>, vector<64x256xf32>
    %cst = arith.constant dense<0.000000e+00> : vector<32x256xf32>
    %6 = tpu.matmul %4, %5, %cst {dimension_numbers = #tpu.dot_dimension_numbers<[1], [0], [0], [1], [0, 0, 1, 1], [], []>} : vector<32x64xf32>, vector<64x256xf32>, vector<32x256xf32> -> vector<32x256xf32>
    %c0_5 = arith.constant 0 : index
    %c0_6 = arith.constant 0 : index
    %7 = vector.load %arg3[%c0_5, %c0_6] : memref<1x256xf32, #tpu.memory_space<vmem>>, vector<1x256xf32>
    %8 = vector.broadcast %7 : vector<1x256xf32> to vector<32x256xf32>
    %9 = arith.addf %6, %8 : vector<32x256xf32>
    %10 = vector.shape_cast %9 : vector<32x256xf32> to vector<4x8x256xf32>
    %c0_7 = arith.constant 0 : index
    %c0_8 = arith.constant 0 : index
    %c0_9 = arith.constant 0 : index
    %11 = vector.load %arg10[%c0_7, %c0_8, %c0_9] : memref<4x8x256xf32, #tpu.memory_space<vmem>>, vector<4x8x256xf32>
    tpu.vector_store %arg10[%c0_7, %c0_8, %c0_9], %10 {strides = array<i32>} : memref<4x8x256xf32, #tpu.memory_space<vmem>>, vector<4x8x256xf32>,
    %c0_10 = arith.constant 0 : index
    %c0_11 = arith.constant 0 : index
    %12 = vector.load %arg4[%c0_10, %c0_11] : memref<64x256xf32, #tpu.memory_space<vmem>>, vector<64x256xf32>
    %c0_12 = arith.constant 0 : index
    %c0_13 = arith.constant 0 : index
    %13 = vector.load %arg13[%c0_12, %c0_13] : memref<8x64xf32, #tpu.memory_space<vmem>>, vector<8x64xf32>
    %c0_14 = arith.constant 0 : index
    %c0_15 = arith.constant 0 : index
    %14 = vector.load %arg14[%c0_14, %c0_15] : memref<8x64xf32, #tpu.memory_space<vmem>>, vector<8x64xf32>
    %c0_i32_16 = arith.constant 0 : i32
    %15 = arith.index_cast %c0_i32_16 : i32 to index
    %c0_17 = arith.constant 0 : index
    %c0_18 = arith.constant 0 : index
    %16 = vector.load %arg10[%15, %c0_17, %c0_18] : memref<4x8x256xf32, #tpu.memory_space<vmem>>, vector<1x8x256xf32>
    %17 = vector.shape_cast %16 : vector<1x8x256xf32> to vector<8x256xf32>
    %cst_19 = arith.constant dense<0.000000e+00> : vector<8x256xf32>
    %18 = tpu.matmul %13, %12, %cst_19 {dimension_numbers = #tpu.dot_dimension_numbers<[1], [0], [0], [1], [0, 0, 1, 1], [], []>} : vector<8x64xf32>, vector<64x256xf32>, vector<8x256xf32> -> vector<8x256xf32>
    %19 = arith.addf %17, %18 : vector<8x256xf32>
    %20 = vector.extract_strided_slice %19 {offsets = [0, 0], sizes = [8, 192], strides = [1, 1]} : vector<8x256xf32> to vector<8x192xf32>
    %cst_20 = arith.constant 5.000000e-01 : f32
    %21 = vector.broadcast %cst_20 : f32 to vector<8x192xf32>
    %22 = arith.mulf %21, %20 : vector<8x192xf32>
    %23 = math.tanh %22 : vector<8x192xf32>
    %cst_21 = arith.constant 5.000000e-01 : f32
    %24 = vector.broadcast %cst_21 : f32 to vector<8x192xf32>
    %25 = arith.mulf %24, %23 : vector<8x192xf32>
    %cst_22 = arith.constant 5.000000e-01 : f32
    %26 = vector.broadcast %cst_22 : f32 to vector<8x192xf32>
    %27 = arith.addf %25, %26 : vector<8x192xf32>
    %28 = vector.extract_strided_slice %19 {offsets = [0, 192], sizes = [8, 64], strides = [1, 1]} : vector<8x256xf32> to vector<8x64xf32>
    %29 = math.tanh %28 : vector<8x64xf32>
    %30 = vector.extract_strided_slice %27 {offsets = [0, 64], sizes = [8, 64], strides = [1, 1]} : vector<8x192xf32> to vector<8x64xf32>
    %31 = arith.mulf %30, %14 : vector<8x64xf32>
    %32 = vector.extract_strided_slice %27 {offsets = [0, 0], sizes = [8, 64], strides = [1, 1]} : vector<8x192xf32> to vector<8x64xf32>
    %33 = arith.mulf %32, %29 : vector<8x64xf32>
    %34 = arith.addf %31, %33 : vector<8x64xf32>
    %35 = vector.extract_strided_slice %27 {offsets = [0, 128], sizes = [8, 64], strides = [1, 1]} : vector<8x192xf32> to vector<8x64xf32>
    %36 = math.tanh %34 : vector<8x64xf32>
    %37 = arith.mulf %35, %36 : vector<8x64xf32>
    %38 = vector.extract_strided_slice %37 {offsets = [0, 0], sizes = [8, 32], strides = [1, 1]} : vector<8x64xf32> to vector<8x32xf32>
    %39 = arith.index_cast %c0_i32_16 : i32 to index
    %c0_23 = arith.constant 0 : index
    %c0_24 = arith.constant 0 : index
    %40 = vector.load %arg11[%39, %c0_23, %c0_24] : memref<4x8x32xf32, #tpu.memory_space<vmem>>, vector<1x8x32xf32>
    %41 = vector.shape_cast %40 : vector<1x8x32xf32> to vector<8x32xf32>
    %42 = vector.shape_cast %38 : vector<8x32xf32> to vector<1x8x32xf32>
    tpu.vector_store %arg11[%39, %c0_23, %c0_24], %42 {strides = array<i32>} : memref<4x8x32xf32, #tpu.memory_space<vmem>>, vector<1x8x32xf32>,
    %43 = vector.extract_strided_slice %37 {offsets = [0, 32], sizes = [8, 32], strides = [1, 1]} : vector<8x64xf32> to vector<8x32xf32>
    %c3_i32 = arith.constant 3 : i32
    %44 = arith.subi %c3_i32, %c0_i32_16 : i32
    %45 = arith.index_cast %44 : i32 to index
    %c0_25 = arith.constant 0 : index
    %c0_26 = arith.constant 0 : index
    %46 = vector.load %arg12[%45, %c0_25, %c0_26] : memref<4x8x32xf32, #tpu.memory_space<vmem>>, vector<1x8x32xf32>
    %47 = vector.shape_cast %46 : vector<1x8x32xf32> to vector<8x32xf32>
    %48 = vector.shape_cast %43 : vector<8x32xf32> to vector<1x8x32xf32>
    tpu.vector_store %arg12[%45, %c0_25, %c0_26], %48 {strides = array<i32>} : memref<4x8x32xf32, #tpu.memory_space<vmem>>, vector<1x8x32xf32>,
    %c1_i32 = arith.constant 1 : i32
    %49 = arith.index_cast %c1_i32 : i32 to index
    %c0_27 = arith.constant 0 : index
    %c0_28 = arith.constant 0 : index
    %50 = vector.load %arg10[%49, %c0_27, %c0_28] : memref<4x8x256xf32, #tpu.memory_space<vmem>>, vector<1x8x256xf32>
    %51 = vector.shape_cast %50 : vector<1x8x256xf32> to vector<8x256xf32>
    %cst_29 = arith.constant dense<0.000000e+00> : vector<8x256xf32>
    %52 = tpu.matmul %37, %12, %cst_29 {dimension_numbers = #tpu.dot_dimension_numbers<[1], [0], [0], [1], [0, 0, 1, 1], [], []>} : vector<8x64xf32>, vector<64x256xf32>, vector<8x256xf32> -> vector<8x256xf32>
    %53 = arith.addf %51, %52 : vector<8x256xf32>
    %54 = vector.extract_strided_slice %53 {offsets = [0, 0], sizes = [8, 192], strides = [1, 1]} : vector<8x256xf32> to vector<8x192xf32>
    %cst_30 = arith.constant 5.000000e-01 : f32
    %55 = vector.broadcast %cst_30 : f32 to vector<8x192xf32>
    %56 = arith.mulf %55, %54 : vector<8x192xf32>
    %57 = math.tanh %56 : vector<8x192xf32>
    %cst_31 = arith.constant 5.000000e-01 : f32
    %58 = vector.broadcast %cst_31 : f32 to vector<8x192xf32>
    %59 = arith.mulf %58, %57 : vector<8x192xf32>
    %cst_32 = arith.constant 5.000000e-01 : f32
    %60 = vector.broadcast %cst_32 : f32 to vector<8x192xf32>
    %61 = arith.addf %59, %60 : vector<8x192xf32>
    %62 = vector.extract_strided_slice %53 {offsets = [0, 192], sizes = [8, 64], strides = [1, 1]} : vector<8x256xf32> to vector<8x64xf32>
    %63 = math.tanh %62 : vector<8x64xf32>
    %64 = vector.extract_strided_slice %61 {offsets = [0, 64], sizes = [8, 64], strides = [1, 1]} : vector<8x192xf32> to vector<8x64xf32>
    %65 = arith.mulf %64, %34 : vector<8x64xf32>
    %66 = vector.extract_strided_slice %61 {offsets = [0, 0], sizes = [8, 64], strides = [1, 1]} : vector<8x192xf32> to vector<8x64xf32>
    %67 = arith.mulf %66, %63 : vector<8x64xf32>
    %68 = arith.addf %65, %67 : vector<8x64xf32>
    %69 = vector.extract_strided_slice %61 {offsets = [0, 128], sizes = [8, 64], strides = [1, 1]} : vector<8x192xf32> to vector<8x64xf32>
    %70 = math.tanh %68 : vector<8x64xf32>
    %71 = arith.mulf %69, %70 : vector<8x64xf32>
    %72 = vector.extract_strided_slice %71 {offsets = [0, 0], sizes = [8, 32], strides = [1, 1]} : vector<8x64xf32> to vector<8x32xf32>
    %73 = arith.index_cast %c1_i32 : i32 to index
    %c0_33 = arith.constant 0 : index
    %c0_34 = arith.constant 0 : index
    %74 = vector.load %arg11[%73, %c0_33, %c0_34] : memref<4x8x32xf32, #tpu.memory_space<vmem>>, vector<1x8x32xf32>
    %75 = vector.shape_cast %74 : vector<1x8x32xf32> to vector<8x32xf32>
    %76 = vector.shape_cast %72 : vector<8x32xf32> to vector<1x8x32xf32>
    tpu.vector_store %arg11[%73, %c0_33, %c0_34], %76 {strides = array<i32>} : memref<4x8x32xf32, #tpu.memory_space<vmem>>, vector<1x8x32xf32>,
    %77 = vector.extract_strided_slice %71 {offsets = [0, 32], sizes = [8, 32], strides = [1, 1]} : vector<8x64xf32> to vector<8x32xf32>
    %c3_i32_35 = arith.constant 3 : i32
    %78 = arith.subi %c3_i32_35, %c1_i32 : i32
    %79 = arith.index_cast %78 : i32 to index
    %c0_36 = arith.constant 0 : index
    %c0_37 = arith.constant 0 : index
    %80 = vector.load %arg12[%79, %c0_36, %c0_37] : memref<4x8x32xf32, #tpu.memory_space<vmem>>, vector<1x8x32xf32>
    %81 = vector.shape_cast %80 : vector<1x8x32xf32> to vector<8x32xf32>
    %82 = vector.shape_cast %77 : vector<8x32xf32> to vector<1x8x32xf32>
    tpu.vector_store %arg12[%79, %c0_36, %c0_37], %82 {strides = array<i32>} : memref<4x8x32xf32, #tpu.memory_space<vmem>>, vector<1x8x32xf32>,
    %c2_i32 = arith.constant 2 : i32
    %83 = arith.index_cast %c2_i32 : i32 to index
    %c0_38 = arith.constant 0 : index
    %c0_39 = arith.constant 0 : index
    %84 = vector.load %arg10[%83, %c0_38, %c0_39] : memref<4x8x256xf32, #tpu.memory_space<vmem>>, vector<1x8x256xf32>
    %85 = vector.shape_cast %84 : vector<1x8x256xf32> to vector<8x256xf32>
    %cst_40 = arith.constant dense<0.000000e+00> : vector<8x256xf32>
    %86 = tpu.matmul %71, %12, %cst_40 {dimension_numbers = #tpu.dot_dimension_numbers<[1], [0], [0], [1], [0, 0, 1, 1], [], []>} : vector<8x64xf32>, vector<64x256xf32>, vector<8x256xf32> -> vector<8x256xf32>
    %87 = arith.addf %85, %86 : vector<8x256xf32>
    %88 = vector.extract_strided_slice %87 {offsets = [0, 0], sizes = [8, 192], strides = [1, 1]} : vector<8x256xf32> to vector<8x192xf32>
    %cst_41 = arith.constant 5.000000e-01 : f32
    %89 = vector.broadcast %cst_41 : f32 to vector<8x192xf32>
    %90 = arith.mulf %89, %88 : vector<8x192xf32>
    %91 = math.tanh %90 : vector<8x192xf32>
    %cst_42 = arith.constant 5.000000e-01 : f32
    %92 = vector.broadcast %cst_42 : f32 to vector<8x192xf32>
    %93 = arith.mulf %92, %91 : vector<8x192xf32>
    %cst_43 = arith.constant 5.000000e-01 : f32
    %94 = vector.broadcast %cst_43 : f32 to vector<8x192xf32>
    %95 = arith.addf %93, %94 : vector<8x192xf32>
    %96 = vector.extract_strided_slice %87 {offsets = [0, 192], sizes = [8, 64], strides = [1, 1]} : vector<8x256xf32> to vector<8x64xf32>
    %97 = math.tanh %96 : vector<8x64xf32>
    %98 = vector.extract_strided_slice %95 {offsets = [0, 64], sizes = [8, 64], strides = [1, 1]} : vector<8x192xf32> to vector<8x64xf32>
    %99 = arith.mulf %98, %68 : vector<8x64xf32>
    %100 = vector.extract_strided_slice %95 {offsets = [0, 0], sizes = [8, 64], strides = [1, 1]} : vector<8x192xf32> to vector<8x64xf32>
    %101 = arith.mulf %100, %97 : vector<8x64xf32>
    %102 = arith.addf %99, %101 : vector<8x64xf32>
    %103 = vector.extract_strided_slice %95 {offsets = [0, 128], sizes = [8, 64], strides = [1, 1]} : vector<8x192xf32> to vector<8x64xf32>
    %104 = math.tanh %102 : vector<8x64xf32>
    %105 = arith.mulf %103, %104 : vector<8x64xf32>
    %106 = vector.extract_strided_slice %105 {offsets = [0, 0], sizes = [8, 32], strides = [1, 1]} : vector<8x64xf32> to vector<8x32xf32>
    %107 = arith.index_cast %c2_i32 : i32 to index
    %c0_44 = arith.constant 0 : index
    %c0_45 = arith.constant 0 : index
    %108 = vector.load %arg11[%107, %c0_44, %c0_45] : memref<4x8x32xf32, #tpu.memory_space<vmem>>, vector<1x8x32xf32>
    %109 = vector.shape_cast %108 : vector<1x8x32xf32> to vector<8x32xf32>
    %110 = vector.shape_cast %106 : vector<8x32xf32> to vector<1x8x32xf32>
    tpu.vector_store %arg11[%107, %c0_44, %c0_45], %110 {strides = array<i32>} : memref<4x8x32xf32, #tpu.memory_space<vmem>>, vector<1x8x32xf32>,
    %111 = vector.extract_strided_slice %105 {offsets = [0, 32], sizes = [8, 32], strides = [1, 1]} : vector<8x64xf32> to vector<8x32xf32>
    %c3_i32_46 = arith.constant 3 : i32
    %112 = arith.subi %c3_i32_46, %c2_i32 : i32
    %113 = arith.index_cast %112 : i32 to index
    %c0_47 = arith.constant 0 : index
    %c0_48 = arith.constant 0 : index
    %114 = vector.load %arg12[%113, %c0_47, %c0_48] : memref<4x8x32xf32, #tpu.memory_space<vmem>>, vector<1x8x32xf32>
    %115 = vector.shape_cast %114 : vector<1x8x32xf32> to vector<8x32xf32>
    %116 = vector.shape_cast %111 : vector<8x32xf32> to vector<1x8x32xf32>
    tpu.vector_store %arg12[%113, %c0_47, %c0_48], %116 {strides = array<i32>} : memref<4x8x32xf32, #tpu.memory_space<vmem>>, vector<1x8x32xf32>,
    %c3_i32_49 = arith.constant 3 : i32
    %117 = arith.index_cast %c3_i32_49 : i32 to index
    %c0_50 = arith.constant 0 : index
    %c0_51 = arith.constant 0 : index
    %118 = vector.load %arg10[%117, %c0_50, %c0_51] : memref<4x8x256xf32, #tpu.memory_space<vmem>>, vector<1x8x256xf32>
    %119 = vector.shape_cast %118 : vector<1x8x256xf32> to vector<8x256xf32>
    %cst_52 = arith.constant dense<0.000000e+00> : vector<8x256xf32>
    %120 = tpu.matmul %105, %12, %cst_52 {dimension_numbers = #tpu.dot_dimension_numbers<[1], [0], [0], [1], [0, 0, 1, 1], [], []>} : vector<8x64xf32>, vector<64x256xf32>, vector<8x256xf32> -> vector<8x256xf32>
    %121 = arith.addf %119, %120 : vector<8x256xf32>
    %122 = vector.extract_strided_slice %121 {offsets = [0, 0], sizes = [8, 192], strides = [1, 1]} : vector<8x256xf32> to vector<8x192xf32>
    %cst_53 = arith.constant 5.000000e-01 : f32
    %123 = vector.broadcast %cst_53 : f32 to vector<8x192xf32>
    %124 = arith.mulf %123, %122 : vector<8x192xf32>
    %125 = math.tanh %124 : vector<8x192xf32>
    %cst_54 = arith.constant 5.000000e-01 : f32
    %126 = vector.broadcast %cst_54 : f32 to vector<8x192xf32>
    %127 = arith.mulf %126, %125 : vector<8x192xf32>
    %cst_55 = arith.constant 5.000000e-01 : f32
    %128 = vector.broadcast %cst_55 : f32 to vector<8x192xf32>
    %129 = arith.addf %127, %128 : vector<8x192xf32>
    %130 = vector.extract_strided_slice %121 {offsets = [0, 192], sizes = [8, 64], strides = [1, 1]} : vector<8x256xf32> to vector<8x64xf32>
    %131 = math.tanh %130 : vector<8x64xf32>
    %132 = vector.extract_strided_slice %129 {offsets = [0, 64], sizes = [8, 64], strides = [1, 1]} : vector<8x192xf32> to vector<8x64xf32>
    %133 = arith.mulf %132, %102 : vector<8x64xf32>
    %134 = vector.extract_strided_slice %129 {offsets = [0, 0], sizes = [8, 64], strides = [1, 1]} : vector<8x192xf32> to vector<8x64xf32>
    %135 = arith.mulf %134, %131 : vector<8x64xf32>
    %136 = arith.addf %133, %135 : vector<8x64xf32>
    %137 = vector.extract_strided_slice %129 {offsets = [0, 128], sizes = [8, 64], strides = [1, 1]} : vector<8x192xf32> to vector<8x64xf32>
    %138 = math.tanh %136 : vector<8x64xf32>
    %139 = arith.mulf %137, %138 : vector<8x64xf32>
    %140 = vector.extract_strided_slice %139 {offsets = [0, 0], sizes = [8, 32], strides = [1, 1]} : vector<8x64xf32> to vector<8x32xf32>
    %141 = arith.index_cast %c3_i32_49 : i32 to index
    %c0_56 = arith.constant 0 : index
    %c0_57 = arith.constant 0 : index
    %142 = vector.load %arg11[%141, %c0_56, %c0_57] : memref<4x8x32xf32, #tpu.memory_space<vmem>>, vector<1x8x32xf32>
    %143 = vector.shape_cast %142 : vector<1x8x32xf32> to vector<8x32xf32>
    %144 = vector.shape_cast %140 : vector<8x32xf32> to vector<1x8x32xf32>
    tpu.vector_store %arg11[%141, %c0_56, %c0_57], %144 {strides = array<i32>} : memref<4x8x32xf32, #tpu.memory_space<vmem>>, vector<1x8x32xf32>,
    %145 = vector.extract_strided_slice %139 {offsets = [0, 32], sizes = [8, 32], strides = [1, 1]} : vector<8x64xf32> to vector<8x32xf32>
    %c3_i32_58 = arith.constant 3 : i32
    %146 = arith.subi %c3_i32_58, %c3_i32_49 : i32
    %147 = arith.index_cast %146 : i32 to index
    %c0_59 = arith.constant 0 : index
    %c0_60 = arith.constant 0 : index
    %148 = vector.load %arg12[%147, %c0_59, %c0_60] : memref<4x8x32xf32, #tpu.memory_space<vmem>>, vector<1x8x32xf32>
    %149 = vector.shape_cast %148 : vector<1x8x32xf32> to vector<8x32xf32>
    %150 = vector.shape_cast %145 : vector<8x32xf32> to vector<1x8x32xf32>
    tpu.vector_store %arg12[%147, %c0_59, %c0_60], %150 {strides = array<i32>} : memref<4x8x32xf32, #tpu.memory_space<vmem>>, vector<1x8x32xf32>,
    %c4_i32 = arith.constant 4 : i32
    %c0_61 = arith.constant 0 : index
    %c0_62 = arith.constant 0 : index
    %151 = vector.load %arg13[%c0_61, %c0_62] : memref<8x64xf32, #tpu.memory_space<vmem>>, vector<8x64xf32>
    tpu.vector_store %arg13[%c0_61, %c0_62], %139 {strides = array<i32>} : memref<8x64xf32, #tpu.memory_space<vmem>>, vector<8x64xf32>,
    %c0_63 = arith.constant 0 : index
    %c0_64 = arith.constant 0 : index
    %152 = vector.load %arg14[%c0_63, %c0_64] : memref<8x64xf32, #tpu.memory_space<vmem>>, vector<8x64xf32>
    tpu.vector_store %arg14[%c0_63, %c0_64], %136 {strides = array<i32>} : memref<8x64xf32, #tpu.memory_space<vmem>>, vector<8x64xf32>,
    %c0_65 = arith.constant 0 : index
    %c0_66 = arith.constant 0 : index
    %c0_67 = arith.constant 0 : index
    %153 = vector.load %arg11[%c0_65, %c0_66, %c0_67] : memref<4x8x32xf32, #tpu.memory_space<vmem>>, vector<4x8x32xf32>
    %154 = vector.shape_cast %153 : vector<4x8x32xf32> to vector<32x32xf32>
    %c0_68 = arith.constant 0 : index
    %c0_69 = arith.constant 0 : index
    %155 = vector.load %arg5[%c0_68, %c0_69] : memref<32x32xf32, #tpu.memory_space<vmem>>, vector<32x32xf32>
    %cst_70 = arith.constant dense<0.000000e+00> : vector<32x32xf32>
    %156 = tpu.matmul %154, %155, %cst_70 {dimension_numbers = #tpu.dot_dimension_numbers<[1], [0], [0], [1], [0, 0, 1, 1], [], []>} : vector<32x32xf32>, vector<32x32xf32>, vector<32x32xf32> -> vector<32x32xf32>
    %c0_71 = arith.constant 0 : index
    %c0_72 = arith.constant 0 : index
    %157 = vector.load %arg7[%c0_71, %c0_72] : memref<1x32xf32, #tpu.memory_space<vmem>>, vector<1x32xf32>
    %158 = vector.broadcast %157 : vector<1x32xf32> to vector<32x32xf32>
    %159 = arith.addf %156, %158 : vector<32x32xf32>
    %c0_73 = arith.constant 0 : index
    %c0_74 = arith.constant 0 : index
    %c0_75 = arith.constant 0 : index
    %160 = vector.load %arg12[%c0_73, %c0_74, %c0_75] : memref<4x8x32xf32, #tpu.memory_space<vmem>>, vector<4x8x32xf32>
    %161 = vector.shape_cast %160 : vector<4x8x32xf32> to vector<32x32xf32>
    %c0_76 = arith.constant 0 : index
    %c0_77 = arith.constant 0 : index
    %162 = vector.load %arg6[%c0_76, %c0_77] : memref<32x32xf32, #tpu.memory_space<vmem>>, vector<32x32xf32>
    %cst_78 = arith.constant dense<0.000000e+00> : vector<32x32xf32>
    %163 = tpu.matmul %161, %162, %cst_78 {dimension_numbers = #tpu.dot_dimension_numbers<[1], [0], [0], [1], [0, 0, 1, 1], [], []>} : vector<32x32xf32>, vector<32x32xf32>, vector<32x32xf32> -> vector<32x32xf32>
    %164 = vector.shape_cast %159 : vector<32x32xf32> to vector<4x8x32xf32>
    %c0_79 = arith.constant 0 : index
    %c0_80 = arith.constant 0 : index
    %c0_81 = arith.constant 0 : index
    %165 = vector.load %arg8[%c0_79, %c0_80, %c0_81] : memref<4x8x32xf32, #tpu.memory_space<vmem>>, vector<4x8x32xf32>
    tpu.vector_store %arg8[%c0_79, %c0_80, %c0_81], %164 {strides = array<i32>} : memref<4x8x32xf32, #tpu.memory_space<vmem>>, vector<4x8x32xf32>,
    %166 = vector.shape_cast %163 : vector<32x32xf32> to vector<4x8x32xf32>
    %c0_82 = arith.constant 0 : index
    %c0_83 = arith.constant 0 : index
    %c0_84 = arith.constant 0 : index
    %167 = vector.load %arg9[%c0_82, %c0_83, %c0_84] : memref<4x8x32xf32, #tpu.memory_space<vmem>>, vector<4x8x32xf32>
    tpu.vector_store %arg9[%c0_82, %c0_83, %c0_84], %166 {strides = array<i32>} : memref<4x8x32xf32, #tpu.memory_space<vmem>>, vector<4x8x32xf32>,
    return
  }
  func.func @transform_0(%arg0: i32) -> (i32, i32, i32) {
    %c0_i32 = arith.constant 0 : i32
    %c0_i32_0 = arith.constant 0 : i32
    %c0_i32_1 = arith.constant 0 : i32
    return %arg0, %c0_i32, %c0_i32_0 : i32, i32, i32
  }
  func.func @transform_1(%arg0: i32) -> (i32, i32) {
    %c0_i32 = arith.constant 0 : i32
    %c0_i32_0 = arith.constant 0 : i32
    %c0_i32_1 = arith.constant 0 : i32
    return %c0_i32, %c0_i32_0 : i32, i32
  }
  func.func @transform_2(%arg0: i32) -> (i32, i32) {
    %c0_i32 = arith.constant 0 : i32
    %c0_i32_0 = arith.constant 0 : i32
    %c0_i32_1 = arith.constant 0 : i32
    return %c0_i32, %c0_i32_0 : i32, i32
  }
  func.func @transform_3(%arg0: i32) -> (i32, i32) {
    %c0_i32 = arith.constant 0 : i32
    %c0_i32_0 = arith.constant 0 : i32
    %c0_i32_1 = arith.constant 0 : i32
    return %c0_i32, %c0_i32_0 : i32, i32
  }
  func.func @transform_4(%arg0: i32) -> (i32, i32) {
    %c0_i32 = arith.constant 0 : i32
    %c0_i32_0 = arith.constant 0 : i32
    %c0_i32_1 = arith.constant 0 : i32
    return %c0_i32, %c0_i32_0 : i32, i32
  }
  func.func @transform_5(%arg0: i32) -> (i32, i32) {
    %c0_i32 = arith.constant 0 : i32
    %c0_i32_0 = arith.constant 0 : i32
    %c0_i32_1 = arith.constant 0 : i32
    return %c0_i32, %c0_i32_0 : i32, i32
  }
  func.func @transform_6(%arg0: i32) -> (i32, i32) {
    %c0_i32 = arith.constant 0 : i32
    %c0_i32_0 = arith.constant 0 : i32
    %c0_i32_1 = arith.constant 0 : i32
    return %c0_i32, %c0_i32_0 : i32, i32
  }
  func.func @transform_7(%arg0: i32) -> (i32, i32, i32) {
    %c0_i32 = arith.constant 0 : i32
    %c0_i32_0 = arith.constant 0 : i32
    %c0_i32_1 = arith.constant 0 : i32
    return %arg0, %c0_i32, %c0_i32_0 : i32, i32, i32
  }
  func.func @transform_8(%arg0: i32) -> (i32, i32, i32) {
    %c1_i32 = arith.constant 1 : i32
    %0 = arith.subi %c1_i32, %arg0 : i32
    %c0_i32 = arith.constant 0 : i32
    %c0_i32_0 = arith.constant 0 : i32
    %c0_i32_1 = arith.constant 0 : i32
    return %0, %c0_i32, %c0_i32_0 : i32, i32, i32
  }
}

</mosaic_0001>

<bundles_post_ra>
// kernel: tpu_custom_call.1
= control target key start
LH: loop header
LB: loop body
LE: loop exit
PB: predicated region body
PF: predicated region fallthrough
CT: control target
= control target key end

     0   :  { %s2532_s0 = inlined_call_operand.hbm [shape: f32[8,8,64], index: 0, kind: input, shape index: {}]   ;;  %s2533_s1 = inlined_call_operand.hbm [shape: f32[64,256], index: 1, kind: input, shape index: {}]   ;;  %s2534_s2 = inlined_call_operand.vmem [shape: f32[1,256], index: 2, kind: input, shape index: {}]   ;;  %s2535_s3 = inlined_call_operand.hbm [shape: f32[64,256], index: 3, kind: input, shape index: {}]   ;;  %s2536_s4 = inlined_call_operand.hbm [shape: f32[32,32], index: 4, kind: input, shape index: {}]   ;;  %s2537_s5 = inlined_call_operand.hbm [shape: f32[32,32], index: 5, kind: input, shape index: {}]   ;;  %s2538_s6 = inlined_call_operand.vmem [shape: f32[1,32], index: 6, kind: input, shape index: {}]   ;;  %s2539_s7 = inlined_call_operand.hbm [shape: f32[8,8,32], index: 7, kind: output, shape index: {0}]   ;;  %s2540_s8 = inlined_call_operand.hbm [shape: f32[8,8,32], index: 8, kind: output, shape index: {1}]  }
   0x1   :  { %2554 = sst [smem:[#allocation28_spill]] %s2533_s1 }
   0x2   :  { %2555 = sst [smem:[#allocation29_spill]] %s2535_s3 }
   0x3   :  { %2556 = sst [smem:[#allocation30_spill]] %s2536_s4 }
   0x4   :  { %2557 = sst [smem:[#allocation31_spill]] %s2537_s5 }
   0x5   :  { %14 = vsyncpa [#allocation8], 0 }
   0x6   :  { %16 = vsyncpa [#allocation8 + $0x1], 0 }
   0x7   :  { %17 = vsyncpa [#allocation11], 0 }
   0x8   :  { %18 = vsyncpa [#allocation14], 0 }
   0x9   :  { %19 = vsyncpa [#allocation9], 0 }
   0xa   :  { %21 = vsyncpa [#allocation9 + $0x1], 0 }
   0xb   :  { %22 = vsyncpa [#allocation18], 0 }
   0xc   :  { %24 = vsyncpa [#allocation18 + $0x1], 0  ;;  %s1998_s27 = smov 0   ;;  %s2000_s28 = smov 0  }
   0xd   :  { %s2002_s29 = smov 0   ;;  %s2004_s30 = smov 0  }
   0xe   :  { %s2006_s9 = smov 0   ;;  %s2008_s10 = smov 0  }
   0xf   :  { %s2010_s11 = smov 0  }
  0x10 LB: > { %2558 = sst [smem:[#allocation24_spill]] %s1910_s27  ;;  %s2034_s12 = sadd.s32 4294967295, %s1934_s11   ;;  %s1934_s11 = sphi %s2010_s11, %s2604_s11   ;;  %s1930_s10 = sphi %s2008_s10, %s2603_s10   ;;  %s1926_s9 = sphi %s2006_s9, %s2602_s9   ;;  %s1922_s30 = sphi %s2004_s30, %s2601_s30   ;;  %s1918_s29 = sphi %s2002_s29, %s2600_s29   ;;  %s1914_s28 = sphi %s2000_s28, %s2599_s28   ;;  %s1910_s27 = sphi %s1998_s27, %s2598_s27  }
  0x11   : > { %s1427_s13 = sadd.s32 4294967294, %s1934_s11   ;;  %p50_p0 = scmp.ne.s32.totalorder %s1926_s9, %s1922_s30 }
  0x12   : > { %p2545_p1 = scmp.eq.s32.totalorder %s2034_s12, 0  ;;  %p2541_p2 = scmp.eq.s32.totalorder %s2034_s12, 1 }
  0x13   : > { %p206_p3 = scmp.eq.s32.totalorder %s1427_s13, 1  ;;  %p227_p6 = scmp.ne.s32.totalorder %s1918_s29, %s1914_s28 }
  0x14   : > { %p2043_p4 = por %p2545_p1, %p50_p0  ;;  %p233_p7 = scmp.ne.s32.totalorder %s1914_s28, %s1910_s27 }
  0x15   : > { %p2048_p5 = por %p206_p3, %p50_p0  ;;  %p1428_p8 = scmp.ge.s32.totalorder %s1934_s11, 1 }
  0x16   : > { %s2559_s14 = scalar_select %p2043_p4, 1, 0 }
  0x17   : > { %s2560_s16 = scalar_select %p2048_p5, 1, 0 }
  0x18   : > { %p2059_p9 = por %p227_p6, %p2541_p2  ;;  %p241_p10 = scmp.lt.s32.totalorder %s1934_s11, 3 }
  0x19   : > { %2561 = sst [smem:[#allocation25_spill]] %s2560_s16  ;;  %p2064_p11 = por %p233_p7, %p206_p3 }
  0x1a   : > { %s2562_s17 = scalar_select %p2059_p9, 1, 0 }
  0x1b   : > { %s2563_s18 = scalar_select %p2064_p11, 1, 0 }
  0x1c   : > { %p2069_p13 = pnand %p1428_p8, %p241_p10  ;;  %s1936_s20 = smov [#allocation10]  }
  0x1d   : > { %2564 = sst [smem:[#allocation26_spill]] %s2563_s18  ;;  %s253_s21 = sshll.u32 %s1936_s20, 4  ;;  %s254_s21 = int_to_ptr.vmem [resolvable:$true] %s253_s21 }
  0x1e   : > { %s2565_s19 = scalar_select %p2069_p13, 1, 0 }
  0x1f   : > { %p1540_p0 = pneg %p2069_p13  ;;  %s1937_s23 = smov [#allocation13]  }
  0x20   : > { %s282_s24 = sshll.u32 %s1937_s23, 4  ;;  %s1687_s25 = scalar_lea.vmem %s254_s21, 2048  ;;  %s283_s24 = int_to_ptr.vmem [resolvable:$true] %s282_s24 }
  0x21   : > { %p2078_p2 = pnand %p1540_p0, %p2545_p1  ;;  %p1688_p7 = scmp.ne.s32.totalorder %s254_s21, %s1687_s25 }
  0x22   : > { %p1695_p12 = scmp.lt.s32.totalorder %s254_s21, %s254_s21  ;;  %p1696_p6 = scmp.lt.s32.totalorder %s1687_s25, %s1687_s25 }
  0x23   : > { %p1678_p3 = pneg %p2078_p2 }
  0x24   : > { %p1697_p11 = por %p1696_p6, %p1695_p12 }
  0x25   : > { %p1690_p8 = pnand %p1688_p7, %p1678_p3 }
  0x27   : > { %p1691_p10 = pneg %p1690_p8 }
  0x29   : > { %p1698_p0 = pnand %p1697_p11, %p1691_p10 }
  0x2b   : > { %1701 = shalt.err (!%p1698_p0)
}
  0x2c   : > { %s2543_s26 = smov 256   ;;  %s2544_s13 = smov 16  }
  0x2d   : > { %s2567_s1 = sld [smem:[#allocation28_spill]]  ;;  %s1713_s15 = scalar_lea.vmem %s283_s24, 512 }
  0x2e   : > { %p1714_p7 = scmp.ne.s32.totalorder %s283_s24, %s1713_s15  ;;  %p1721_p11 = scmp.lt.s32.totalorder %s283_s24, %s283_s24 }
  0x2f   : > { %p1722_p6 = scmp.lt.s32.totalorder %s1713_s15, %s1713_s15 }
  0x30   : > { %p1716_p8 = pnand %p1714_p7, %p1678_p3 }
  0x31   : > { %p1723_p10 = por %p1722_p6, %p1721_p11 }
  0x32   : > { %p1717_p12 = pneg %p1716_p8 }
  0x33   : > { %1543 = dma.hbm_to_vmem [thread:$0]  (!%p2078_p2), %s2567_s1, 2048, %s254_s21, [#allocation11], %s2543_s26, %s2543_s26, %s2544_s13  }
  0x34   : > { %p1724_p0 = pnand %p1723_p10, %p1717_p12 }
  0x36   : > { %1727 = shalt.err (!%p1724_p0)
}
  0x37   : > { %s2546_s25 = smov 128   ;;  %s2547_s18 = smov 8  }
  0x38   : > { %s2568_s4 = sld [smem:[#allocation30_spill]]  ;;  %s1942_s23 = smov [#allocation12]  }
  0x39   : > { %s269_s26 = sshll.u32 %s1942_s23, 4  ;;  %s1943_s13 = smov [#allocation15]   ;;  %s270_s26 = int_to_ptr.vmem [resolvable:$true] %s269_s26 }
  0x3a   : > { %s295_s15 = sshll.u32 %s1943_s13, 4  ;;  %s1739_s1 = scalar_lea.vmem %s270_s26, 2048  ;;  %s296_s15 = int_to_ptr.vmem [resolvable:$true] %s295_s15 }
  0x3b   : > { %p1740_p7 = scmp.ne.s32.totalorder %s270_s26, %s1739_s1  ;;  %p1747_p11 = scmp.lt.s32.totalorder %s270_s26, %s270_s26 }
  0x3c   : > { %p1748_p6 = scmp.lt.s32.totalorder %s1739_s1, %s1739_s1 }
  0x3d   : > { %p1742_p8 = pnand %p1740_p7, %p1678_p3 }
  0x3e   : > { %1549 = dma.hbm_to_vmem [thread:$0]  (!%p2078_p2), %s2568_s4, 512, %s283_s24, [#allocation14], %s2546_s25, %s2546_s25, %s2547_s18  }
  0x3f   : > { %p1743_p12 = pneg %p1742_p8  ;;  %p1749_p10 = por %p1748_p6, %p1747_p11 }
  0x41   : > { %p1750_p0 = pnand %p1749_p10, %p1743_p12 }
  0x43   : > { %1753 = shalt.err (!%p1750_p0)
}
  0x44   : > { %s2569_s21 = smov 16   ;;  %s2570_s24 = smov 256  }
  0x45   : > { %s2571_s3 = sld [smem:[#allocation29_spill]]  ;;  %s1765_s13 = scalar_lea.vmem %s296_s15, 512 }
  0x46   : > { %p1766_p1 = scmp.ne.s32.totalorder %s296_s15, %s1765_s13  ;;  %p1773_p11 = scmp.lt.s32.totalorder %s296_s15, %s296_s15 }
  0x47   : > { %p1774_p12 = scmp.lt.s32.totalorder %s1765_s13, %s1765_s13 }
  0x48   : > { %p1768_p7 = pnand %p1766_p1, %p1678_p3 }
  0x49   : > { %p1775_p6 = por %p1774_p12, %p1773_p11 }
  0x4a   : > { %p1769_p8 = pneg %p1768_p7 }
  0x4b   : > { %1546 = dma.hbm_to_vmem [thread:$0]  (!%p2078_p2), %s2571_s3, 2048, %s270_s26, [#allocation11], %s2570_s24, %s2570_s24, %s2569_s21  }
  0x4c   : > { %p1776_p10 = pnand %p1775_p6, %p1769_p8 }
  0x4e   : > { %1779 = shalt.err (!%p1776_p10)
}
  0x4f   : > { %s2572_s5 = sld [smem:[#allocation31_spill]]  ;;  %s2129_s26 = sadd.s32 1, %s1934_s11  }
  0x50   : > { %s34_s22 = ssub.s32 %s1934_s11, %s2129_s26  ;;  %s37_s21 = sadd.s32 1, %s1930_s10 }
  0x51   : > { %p35_p1 = scmp.eq.s32.totalorder %s34_s22, 0  ;;  %p44_p3 = scmp.ne.s32.totalorder %s1930_s10, %s1926_s9 }
  0x52   : > { %p45_p0 = scmp.eq.s32.totalorder %s1934_s11, 0  ;;  %s212_s24 = ssub.s32 1, %s1934_s11 }
  0x53   : > { %s2139_s23 = scalar_select %p35_p1, %s1930_s10, %s37_s21  }
  0x54   : > { %p2141_p7 = por %p45_p0, %p44_p3  ;;  %s213_s1 = ssub.s32 1, %s2129_s26 }
  0x55   : > { %1552 = dma.hbm_to_vmem [thread:$0]  (!%p2078_p2), %s2572_s5, 512, %s296_s15, [#allocation14], %s2546_s25, %s2546_s25, %s2547_s18  }
  0x56   : > { %2573 = sst [smem:[#allocation27_spill]] %s2139_s23  ;;  %p2575_p2 = scmp.eq.s32.totalorder %s2034_s12, 1 }
  0x57   : > { %p1568_p11 = scmp.lt.s32.totalorder %s1934_s11, 2  ;;  %s214_s20 = ssub.s32 %s212_s24, %s213_s1 }
  0x58   : > { %p2147_p8 = por %p2575_p2, %p44_p3  ;;  %s312_s25 = sand.u32 1, %s1930_s10  }
  0x59   : > { %p215_p12 = scmp.eq.s32.totalorder %s214_s20, 0  ;;  %s1434_s22 = sshll.u32 %s312_s25, 5 }
  0x5a   : > { %s2576_s15 = scalar_select %p2147_p8, 1, 0 }
  0x5b   : > { %s1471_s18 = sshll.u32 %s1934_s11, 9  ;;  %s2577_s3 = sadd.s32 1, %s1918_s29 }
  0x5c   : > { %s2158_s21 = scalar_select %p215_p12, %s1918_s29, %s2577_s3  }
  0x5d   : > { %s2163_s23 = scalar_lea.hbm %s2532_s0, %s1471_s18  ;;  %s316_s27 = scalar_lea.vmem [#allocation7], %s1434_s22 }
  0x5e   : > { %s323_s16 = sshll.u32 %s316_s27, 4  ;;  %p2167_p6 = pnand %p1568_p11, %p2141_p7  ;;  %s2171_s16 = int_to_ptr.vmem [resolvable:$true] %s323_s16 }
  0x5f   : > { %s2173_s3 = scalar_lea.sflag [#allocation8], %s312_s25  ;;  %s1780_s1 = scalar_lea.hbm %s2163_s23, 512 }
  0x60   : > { %p1781_p10 = scmp.ne.s32.totalorder %s2163_s23, %s1780_s1  ;;  %p1782_p1 = pneg %p2167_p6 }
  0x61   : > { %s1785_s27 = scalar_lea.hbm %s2532_s0, 1024  ;;  %p1786_p7 = scmp.lt.s32.totalorder %s2163_s23, %s2532_s0 }
  0x62   : > { %p1783_p3 = pnand %p1782_p1, %p1781_p10  ;;  %p1787_p2 = scmp.lt.s32.totalorder %s1785_s27, %s1780_s1 }
  0x64   : > { %p1784_p0 = pneg %p1783_p3  ;;  %p1788_p11 = por %p1787_p2, %p1786_p7 }
  0x66   : > { %p1789_p12 = pnand %p1788_p11, %p1784_p0 }
  0x68   : > { %1792 = shalt.err (!%p1789_p12)
}
  0x69   : > { %s1793_s25 = scalar_lea.vmem %s2171_s16, 512  ;;  %s1944_s20 = smov [#allocation7]  }
  0x6a   : > { %p1794_p5 = scmp.ne.s32.totalorder %s2171_s16, %s1793_s25  ;;  %s1798_s22 = sshll.u32 %s1944_s20, 4  ;;  %s1799_s22 = int_to_ptr.vmem [resolvable:$false] %s1798_s22 }
  0x6b   : > { %s1800_s4 = scalar_lea.vmem %s1799_s22, 1024  ;;  %p1801_p3 = scmp.lt.s32.totalorder %s2171_s16, %s1799_s22 }
  0x6c   : > { %p1796_p9 = pnand %p1794_p5, %p1782_p1  ;;  %p1802_p8 = scmp.lt.s32.totalorder %s1800_s4, %s1793_s25 }
  0x6e   : > { %p1797_p10 = pneg %p1796_p9  ;;  %p1803_p4 = por %p1802_p8, %p1801_p3 }
  0x70   : > { %p1804_p13 = pnand %p1803_p4, %p1797_p10 }
  0x72   : > { %1807 = shalt.err (!%p1804_p13)
}
  0x73   : > { %s2579_s1 = smov 8   ;;  %s2580_s5 = smov 128  }
  0x74   : > { %1556 = dma.hbm_to_vmem [thread:$0]  (!%p2167_p6), %s2163_s23, 512, %s2171_s16, %s2173_s3, %s2580_s5, %s2580_s5, %s2579_s1  }
  0x75   : > { %p2581_p5 = scmp.ne.s32.totalorder %s2565_s19, 0 }
  0x76   : > { %s2200_s27 = sand.u32 (!%p2581_p5), 1, %s1926_s9   ;;  %p2582_p4 = scmp.ne.s32.totalorder (!%p2581_p5), %s2559_s14, 0 }
  0x77   : > { %335 = sbr.rel (%p2581_p5) target bundleno = 2801 (0xaf1), region = 48  ;;  %s1438_s18 = sshll.u32 (!%p2581_p5), %s2200_s27, 5 }
  0x78   : > { %s338_s13 = scalar_lea.sflag (!%p2581_p5), [#allocation8], %s2200_s27  ;;  %s2204_s25 = scalar_lea.vmem (!%p2581_p5), [#allocation7], %s1438_s18 }
  0x7c   : > { %1889 = dma.done.wait (%p2582_p4), %s338_s13, 512  }
  0x7d   : > { %1891 = vsyncadd (%p2582_p4), %s338_s13, 4294966784  ;;  %p2583_p9 = scmp.eq.s32.totalorder %s2034_s12, 0 }
  0x7f   : > { %1893 = dma.done.wait (%p2583_p9), [#allocation11], 4096   ;;  %p2584_p13 = pmov %p2583_p9 }
  0x80   : > { %p2585_p8 = pmov %p2583_p9 }
  0x81   : > { %1895 = vsyncadd (%p2584_p13), [#allocation11], 4294963200 }
  0x82   : > { %1897 = dma.done.wait (%p2585_p8), [#allocation14], 1024   ;;  %p2586_p6 = pmov %p2585_p8 }
  0x83   : > { %s392_s16 = sand.u32 1, %s1914_s28   ;;  %s2221_s23 = scalar_lea.vmem [#allocation16], %s1438_s18 }
  0x84   : > { %1899 = vsyncadd (%p2586_p6), [#allocation14], 4294966272  ;;  %s1444_s19 = sshll.u32 %s392_s16, 5  ;;  %p2587_p1 = scmp.ne.s32.totalorder %s2034_s12, 0 }
  0x85   : > { %s2223_s14 = scalar_lea.vmem [#allocation17], %s1444_s19 }
  0x86   : > { %402 = sbr.rel (%p2587_p1) target bundleno = 141 (0x8d), region = 72 }
  0x8b   : > { %vm403_vm0 = vcmask 523264   ;;  %v1945_v0 = vmov 0.0  }
  0x8c   : > { %404 = vst.msk [vmem:[#allocation5] sm:$0xff] %vm403_vm0, %v1945_v0  ;;  %405 = vst.msk [vmem:[#allocation6] sm:$0xff] %vm403_vm0, %v1945_v0 }
  0x8d PF: > { %v425_v1 = vld [vmem:[#allocation10 + $0x78] sm:$0xff]  ;;  %v424_v3 = vld [vmem:[#allocation10 + $0x70] sm:$0xff]  ;;  %v423_v5 = vld [vmem:[#allocation10 + $0x68] sm:$0xff]  ;;  %vm438_vm1 = vcmask 523264   ;;  %v1946_v35 = vmov 0.0   ;;  %v428_v36 = vlaneseq  ;;  %s1947_s20 = smov 64  }
  0x8e   : > { %v2227_v2 = vld [vmem:[#allocation12 + $0x78] sm:$0xff]  ;;  %467 = vmatprep.subr.mxu0 %v425_v1  ;;  %v2230_v4 = vld [vmem:[#allocation12 + $0x70] sm:$0xff]  ;;  %v2232_v6 = vld [vmem:[#allocation12 + $0x68] sm:$0xff]  ;;  %515 = vmatprep.mubr.f32.mxu0 %v1946_v35  ;;  %vm674_vm2 = vcmask 261120   ;;  %s1948_s1 = smov 96   ;;  %s1472_s5 = sshll.u32 %s2034_s12, 9 }
  0x8f   : > { %587 = vmatprep.subr.mxu1 %v2227_v2  ;;  %468 = vmatpush1.msra.mxu0 %v424_v3  ;;  %v422_v7 = vld [vmem:[#allocation10 + $0x60] sm:$0xff]  ;;  %v421_v9 = vld [vmem:[#allocation10 + $0x58] sm:$0xff]  ;;  %v420_v11 = vld [vmem:[#allocation10 + $0x50] sm:$0xff]  ;;  %v429_v37 = vshrl.u32 %v428_v36, 7  ;;  %s1267_s18 = sshll.u32 %s2221_s23, 4  ;;  %s2423_s19 = scalar_lea.hbm %s2539_s7, %s1472_s5  ;;  %s2425_s18 = int_to_ptr.vmem [resolvable:$true] %s1267_s18 }
  0x90   : > { %588 = vmatpush1.msra.mxu1 %v2230_v4  ;;  %v2235_v8 = vld [vmem:[#allocation12 + $0x60] sm:$0xff]  ;;  %469 = vmatprep.subr.mxu0 %v423_v5  ;;  %v2238_v10 = vld [vmem:[#allocation12 + $0x58] sm:$0xff]  ;;  %v2240_v12 = vld [vmem:[#allocation12 + $0x50] sm:$0xff]  ;;  %s1249_s24 = scalar_lea.sflag [#allocation9], %s2200_s27  ;;  %s1808_s3 = scalar_lea.vmem %s2425_s18, 512 }
  0x91   : > { %589 = vmatprep.subr.mxu1 %v2232_v6  ;;  %470 = vmatpush1.msra.mxu0 %v422_v7  ;;  %v419_v13 = vld [vmem:[#allocation10 + $0x48] sm:$0xff]  ;;  %v418_v15 = vld [vmem:[#allocation10 + $0x40] sm:$0xff]  ;;  %v417_v17 = vld [vmem:[#allocation10 + $0x38] sm:$0xff]  ;;  %v430_v38 = vsub.s32 0, %v429_v37  ;;  %v434_v40 = vsub.s32 1, %v429_v37  ;;  %p1809_p0 = scmp.ne.s32.totalorder %s2425_s18, %s1808_s3  ;;  %p2588_p7 = scmp.ne.s32.totalorder %s2576_s15, 0 }
  0x92   : > { %590 = vmatpush1.msra.mxu1 %v2235_v8  ;;  %v2243_v14 = vld [vmem:[#allocation12 + $0x48] sm:$0xff]  ;;  %471 = vmatprep.subr.mxu0 %v421_v9  ;;  %v2246_v16 = vld [vmem:[#allocation12 + $0x40] sm:$0xff]  ;;  %v2249_v18 = vld [vmem:[#allocation12 + $0x38] sm:$0xff] }
  0x93   : > { %591 = vmatprep.subr.mxu1 %v2238_v10  ;;  %472 = vmatpush1.msra.mxu0 %v420_v11  ;;  %v416_v19 = vld [vmem:[#allocation10 + $0x30] sm:$0xff]  ;;  %v415_v21 = vld [vmem:[#allocation10 + $0x28] sm:$0xff]  ;;  %v414_v23 = vld [vmem:[#allocation10 + $0x20] sm:$0xff]  ;;  %p1810_p2 = pnand %p1809_p0, %p2588_p7 }
  0x94   : > { %592 = vmatpush1.msra.mxu1 %v2240_v12  ;;  %473 = vmatprep.subr.mxu0 %v419_v13  ;;  %v2252_v20 = vld [vmem:[#allocation12 + $0x30] sm:$0xff]  ;;  %v2255_v22 = vld [vmem:[#allocation12 + $0x28] sm:$0xff]  ;;  %v2258_v24 = vld [vmem:[#allocation12 + $0x20] sm:$0xff] }
  0x95   : > { %593 = vmatprep.subr.mxu1 %v2243_v14  ;;  %474 = vmatpush1.msra.mxu0 %v418_v15  ;;  %v413_v25 = vld [vmem:[#allocation10 + $0x18] sm:$0xff]  ;;  %v412_v27 = vld [vmem:[#allocation10 + $0x10] sm:$0xff]  ;;  %v411_v29 = vld [vmem:[#allocation10 + $0x8] sm:$0xff]  ;;  %p1811_p11 = pneg %p1810_p2 }
  0x96   : > { %594 = vmatpush1.msra.mxu1 %v2246_v16  ;;  %475 = vmatprep.subr.mxu0 %v417_v17  ;;  %v2261_v26 = vld [vmem:[#allocation12 + $0x18] sm:$0xff]  ;;  %v2264_v28 = vld [vmem:[#allocation12 + $0x10] sm:$0xff]  ;;  %v2267_v30 = vld [vmem:[#allocation12 + $0x8] sm:$0xff] }
  0x97   : > { %595 = vmatprep.subr.mxu1 %v2249_v18  ;;  %476 = vmatpush1.msra.mxu0 %v416_v19  ;;  %v410_v31 = vld [vmem:[#allocation10] sm:$0xff]  ;;  %v564_v34 = vld [vmem:[#allocation5] sm:$0xff]  ;;  %v565_v52 = vld [vmem:[#allocation6] sm:$0xff] }
  0x98   : > { %596 = vmatpush1.msra.mxu1 %v2252_v20  ;;  %477 = vmatprep.subr.mxu0 %v415_v21  ;;  %v2271_v32 = vld [vmem:[#allocation12] sm:$0xff]  ;;  %v426_v39 = vld [vmem:[%s2534_s2] sm:$0x3]  ;;  %v407_v59 = vld [vmem:[%s2204_s25 + $0x8] sm:$0xff] }
  0x99   : > { %597 = vmatprep.subr.mxu1 %v2255_v22  ;;  %478 = vmatpush1.msra.mxu0 %v414_v23  ;;  %v406_v33 = vld [vmem:[%s2204_s25] sm:$0xff]  ;;  %v2318_v41 = vrot.slane %v426_v39, %v430_v38  ;;  %v2320_v42 = vrot.slane %v426_v39, %v434_v40  ;;  %v408_v60 = vld [vmem:[%s2204_s25 + $0x10] sm:$0xff]  ;;  %v409_v61 = vld [vmem:[%s2204_s25 + $0x18] sm:$0xff] }
  0x9a   : > { %598 = vmatpush1.msra.mxu1 %v2258_v24  ;;  %479 = vmatprep.subr.mxu0 %v413_v25  ;;  %v1029_v39 = vld [vmem:[#allocation13 + $0x10] sm:$0xff] }
  0x9b   : > { %599 = vmatprep.subr.mxu1 %v2261_v26  ;;  %480 = vmatpush1.msra.mxu0 %v412_v27 }
  0x9c   : > { %600 = vmatpush1.msra.mxu1 %v2264_v28  ;;  %481 = vmatprep.subr.mxu0 %v411_v29 }
  0x9d   : > { %601 = vmatprep.subr.mxu1 %v2267_v30  ;;  %482 = vmatpush1.msra.mxu0 %v410_v31  ;;  %v1030_v31 = vld [vmem:[#allocation13 + $0x18] sm:$0xff] }
  0x9e   : > { %602 = vmatpush1.msra.mxu1 %v2271_v32  ;;  %635 = vmatprep.mubr.f32.mxu1 %v1946_v35 }
  0x9f   : > { %1446 = vmatmul.mubr.msk.f32.vlgmr.msra.gmra.mxu0 %vm438_vm1, %v406_v33  ;;  %1450 = vmatmul.mubr.msk.f32.vlgmr.msra.gmra.mxu1 %vm438_vm1, %v564_v34 }
  0xa0   : > { %703 = vmatprep.subr.mxu0 %v2227_v2  ;;  %521 = vmatprep.mubr.f32.mxu0 %v1946_v35 }
  0xa1   : > { %704 = vmatpush1.msra.mxu0 %v2230_v4  ;;  %815 = vmatprep.subr.mxu1 %v2227_v2 }
  0xa2   : > { %705 = vmatprep.subr.mxu0 %v2232_v6  ;;  %816 = vmatpush1.msra.mxu1 %v2230_v4 }
  0xa3   : > { %706 = vmatpush1.msra.mxu0 %v2235_v8  ;;  %817 = vmatprep.subr.mxu1 %v2232_v6 }
  0xa4   : > { %707 = vmatprep.subr.mxu0 %v2238_v10  ;;  %818 = vmatpush1.msra.mxu1 %v2235_v8 }
  0xa5   : > { %708 = vmatpush1.msra.mxu0 %v2240_v12  ;;  %819 = vmatprep.subr.mxu1 %v2238_v10 }
  0xa6   : > { %709 = vmatprep.subr.mxu0 %v2243_v14  ;;  %820 = vmatpush1.msra.mxu1 %v2240_v12 }
  0xa7   : > { %710 = vmatpush1.msra.mxu0 %v2246_v16  ;;  %821 = vmatprep.subr.mxu1 %v2243_v14 }
  0xa8   : > { %711 = vmatprep.subr.mxu0 %v2249_v18  ;;  %822 = vmatpush1.msra.mxu1 %v2246_v16 }
  0xa9   : > { %712 = vmatpush1.msra.mxu0 %v2252_v20  ;;  %823 = vmatprep.subr.mxu1 %v2249_v18 }
  0xaa   : > { %713 = vmatprep.subr.mxu0 %v2255_v22  ;;  %824 = vmatpush1.msra.mxu1 %v2252_v20 }
  0xab   : > { %714 = vmatpush1.msra.mxu0 %v2258_v24  ;;  %825 = vmatprep.subr.mxu1 %v2255_v22 }
  0xac   : > { %715 = vmatprep.subr.mxu0 %v2261_v26  ;;  %826 = vmatpush1.msra.mxu1 %v2258_v24 }
  0xad   : > { %716 = vmatpush1.msra.mxu0 %v2264_v28  ;;  %827 = vmatprep.subr.mxu1 %v2261_v26 }
  0xae   : > { %717 = vmatprep.subr.mxu0 %v2267_v30  ;;  %828 = vmatpush1.msra.mxu1 %v2264_v28 }
  0xaf   : > { %718 = vmatpush1.msra.mxu0 %v2271_v32  ;;  %829 = vmatprep.subr.mxu1 %v2267_v30 }
  0xb0   : > { %830 = vmatpush1.msra.mxu1 %v2271_v32  ;;  %863 = vmatprep.mubr.f32.mxu1 %v1946_v35 }
  0xb1   : > { %927 = vmatprep.subr.mxu0 %v2227_v2  ;;  %1447 = vmatmul.mubr.msk.f32.gmra.mxu0 %vm438_vm1, %v407_v59 }
  0xb2   : > { %527 = vmatprep.mubr.f32.mxu0 %v1946_v35  ;;  %1490 = vmatprep.subr.mxu1 %v1030_v31 }
  0xb5   : > { %1448 = vmatmul.mubr.msk.f32.gmra.mxu0 %vm438_vm1, %v408_v60 }
  0xb6   : > { %533 = vmatprep.mubr.f32.mxu0 %v1946_v35 }
  0xb9   : > { %1449 = vmatmul.mubr.msk.f32.gmra.mxu0 %vm438_vm1, %v409_v61 }
  0xba   : > { %751 = vmatprep.mubr.f32.mxu0 %v1946_v35 }
 0x15f   : > { %v517_v43 = vpop.f32.mrf.mxu0  ;;  %v637_v44 = vpop.f32.mrf.mxu1 }
 0x160   : > { %v518_v45 = vadd.f32 %v517_v43, %v2318_v41  ;;  %v1028_v43 = vld [vmem:[#allocation13 + $0x8] sm:$0xff] }
 0x161   : > { %v519_v46 = vpop.f32.mrf.mxu0  ;;  %v639_v49 = vpop.f32.mrf.mxu1 }
 0x162   : > { %v642_v47 = vadd.f32 %v637_v44, %v518_v45  ;;  %v520_v48 = vadd.f32 %v519_v46, %v2320_v42  ;;  %v1027_v44 = vld [vmem:[#allocation13] sm:$0xff] }
 0x164   : > { %v643_v50 = vadd.f32 %v639_v49, %v520_v48  ;;  %v644_v53 = vmul.f32 0.5, %v642_v47 }
 0x166   : > { %1644 = vtanh.f32 %v643_v50  ;;  %v645_v3 = vmul.f32 0.5, %v643_v50 }
 0x167   : > { %1646 = vtanh.f32 %v644_v53 }
 0x173   : > { %v1645_v51 = vpop.eup %1644 }
 0x174   : > { %659 = vrot.lane.b32.xlu0 %v1645_v51, %s1947_s20  ;;  %v1647_v54 = vpop.eup %1646 }
 0x175   : > { %v648_v55 = vmul.f32 0.5, %v1647_v54 }
 0x177   : > { %v650_v56 = vadd.f32 0.5, %v648_v55 }
 0x178   : > { %654 = vrot.lane.b32.xlu0 %v565_v52, %s1947_s20  ;;  %v2381_v52 = vld [vmem:[%s2538_s6] ss:$0 sm:$0xff] }
 0x1e6   : > { %v660_v57 = vpop.permute.xlu0 %659 }
 0x1e7   : > { %v662_v58 = vmul.f32 %v660_v57, %v650_v56 }
 0x1e9   : > { %664 = vrot.lane.b32.xlu1 %v662_v58, %s1947_s20 }
 0x1ea   : > { %v655_v62 = vpop.permute.xlu0 %654 }
 0x1eb   : > { %v657_v63 = vmul.f32 %v655_v62, %v650_v56 }
 0x25b   : > { %v665_v0 = vpop.permute.xlu1 %664 }
 0x25c   : > { %v667_v1 = vadd.f32 %v665_v0, %v657_v63 }
 0x25e   : > { %1648 = vtanh.f32 %v667_v1 }
 0x25f   : > { %1650 = vtanh.f32 %v645_v3 }
 0x26b   : > { %v1649_v2 = vpop.eup %1648 }
 0x26c   : > { %670 = vrot.lane.b32.xlu1 %v1649_v2, %s1947_s20  ;;  %v1651_v5 = vpop.eup %1650 }
 0x26d   : > { %v649_v7 = vmul.f32 0.5, %v1651_v5 }
 0x26f   : > { %v651_v9 = vadd.f32 0.5, %v649_v7 }
 0x2de   : > { %v671_v11 = vpop.permute.xlu1 %670 }
 0x2df   : > { %v2337_v13 = vmul.f32 %v671_v11, %v651_v9 }
 0x2e1   : > { %675 = vst.msk [vmem:[#allocation3] sm:$0xff] %vm674_vm2, %v2337_v13  ;;  %1451 = vmatmul.mubr.msk.f32.vlgmr.msra.gmra.mxu0 %vm438_vm1, %v2337_v13 }
 0x2e2   : > { %928 = vmatpush1.msra.mxu0 %v2230_v4  ;;  %975 = vmatprep.mubr.f32.mxu0 %v1946_v35  ;;  %v523_v4 = vpop.f32.mrf.mxu0 }
 0x2e3   : > { %929 = vmatprep.subr.mxu0 %v2232_v6  ;;  %v524_v15 = vadd.f32 %v523_v4, %v2318_v41 }
 0x2e4   : > { %930 = vmatpush1.msra.mxu0 %v2235_v8  ;;  %v525_v6 = vpop.f32.mrf.mxu0 }
 0x2e5   : > { %931 = vmatprep.subr.mxu0 %v2238_v10  ;;  %v526_v17 = vadd.f32 %v525_v6, %v2320_v42 }
 0x2e6   : > { %932 = vmatpush1.msra.mxu0 %v2240_v12  ;;  %v529_v8 = vpop.f32.mrf.mxu0 }
 0x2e7   : > { %933 = vmatprep.subr.mxu0 %v2243_v14  ;;  %v530_v46 = vadd.f32 %v529_v8, %v2318_v41 }
 0x2e8   : > { %934 = vmatpush1.msra.mxu0 %v2246_v16  ;;  %v531_v10 = vpop.f32.mrf.mxu0  ;;  %v1023_v40 = vld [vmem:[#allocation3] sm:$0xff] }
 0x2e9   : > { %935 = vmatprep.subr.mxu0 %v2249_v18  ;;  %v532_v48 = vadd.f32 %v531_v10, %v2320_v42 }
 0x2ea   : > { %936 = vmatpush1.msra.mxu0 %v2252_v20  ;;  %v2359_v12 = vpop.f32.mrf.mxu0 }
 0x2eb   : > { %937 = vmatprep.subr.mxu0 %v2255_v22  ;;  %v536_v10 = vadd.f32 %v2359_v12, %v2318_v41 }
 0x2ec   : > { %938 = vmatpush1.msra.mxu0 %v2258_v24  ;;  %v2361_v14 = vpop.f32.mrf.mxu0 }
 0x2ed   : > { %939 = vmatprep.subr.mxu0 %v2261_v26 }
 0x2ee   : > { %940 = vmatpush1.msra.mxu0 %v2264_v28 }
 0x2ef   : > { %941 = vmatprep.subr.mxu0 %v2267_v30 }
 0x2f0   : > { %942 = vmatpush1.msra.mxu0 %v2271_v32 }
 0x3a1   : > { %v753_v16 = vpop.f32.mrf.mxu0 }
 0x3a2   : > { %v758_v18 = vadd.f32 %v753_v16, %v524_v15  ;;  %v538_v16 = vadd.f32 %v2361_v14, %v2320_v42 }
 0x3a3   : > { %v755_v19 = vpop.f32.mrf.mxu0 }
 0x3a4   : > { %v759_v20 = vadd.f32 %v755_v19, %v526_v17  ;;  %v760_v22 = vmul.f32 0.5, %v758_v18 }
 0x3a6   : > { %1652 = vtanh.f32 %v759_v20  ;;  %v761_v33 = vmul.f32 0.5, %v759_v20 }
 0x3a7   : > { %1654 = vtanh.f32 %v760_v22 }
 0x3b3   : > { %v1653_v21 = vpop.eup %1652 }
 0x3b4   : > { %771 = vrot.lane.b32.xlu0 %v1653_v21, %s1947_s20  ;;  %v1655_v23 = vpop.eup %1654 }
 0x3b5   : > { %v764_v24 = vmul.f32 0.5, %v1655_v23 }
 0x3b7   : > { %v766_v25 = vadd.f32 0.5, %v764_v24 }
 0x3b9   : > { %v769_v28 = vmul.f32 %v766_v25, %v667_v1 }
 0x426   : > { %v772_v26 = vpop.permute.xlu0 %771 }
 0x427   : > { %v774_v27 = vmul.f32 %v772_v26, %v766_v25 }
 0x429   : > { %776 = vrot.lane.b32.xlu1 %v774_v27, %s1947_s20 }
 0x49b   : > { %v777_v29 = vpop.permute.xlu1 %776 }
 0x49c   : > { %v779_v30 = vadd.f32 %v777_v29, %v769_v28  ;;  %v1142_v28 = vld [vmem:[#allocation15 + $0x18] sm:$0xff]  ;;  %v1141_v29 = vld [vmem:[#allocation15 + $0x10] sm:$0xff] }
 0x49e   : > { %1656 = vtanh.f32 %v779_v30 }
 0x49f   : > { %1658 = vtanh.f32 %v761_v33 }
 0x4ab   : > { %v1657_v32 = vpop.eup %1656 }
 0x4ac   : > { %782 = vrot.lane.b32.xlu0 %v1657_v32, %s1947_s20  ;;  %v1659_v34 = vpop.eup %1658  ;;  %v1139_v32 = vld [vmem:[#allocation15] sm:$0xff] }
 0x4ad   : > { %v765_v35 = vmul.f32 0.5, %v1659_v34 }
 0x4af   : > { %v767_v36 = vadd.f32 0.5, %v765_v35 }
 0x51e   : > { %v783_v37 = vpop.permute.xlu0 %782 }
 0x51f   : > { %v2368_v38 = vmul.f32 %v783_v37, %v767_v36 }
 0x521   : > { %787 = vst.msk [vmem:[#allocation3 + $0x8] sm:$0xff] %vm674_vm2, %v2368_v38  ;;  %1452 = vmatmul.mubr.msk.f32.vlgmr.msra.gmra.mxu1 %vm438_vm1, %v2368_v38 }
 0x522   : > { %1491 = vmatpush3.msra.mxu1 %v1030_v31  ;;  %1498 = vmatprep.mubr.msk.f32.mxu1 %vm674_vm2, %v1023_v40  ;;  %v1140_v31 = vld [vmem:[#allocation15 + $0x8] sm:$0xff] }
 0x523   : > { %1492 = vmatprep.subr.mxu1 %v1029_v39 }
 0x524   : > { %1493 = vmatpush3.msra.mxu1 %v1029_v39 }
 0x525   : > { %1494 = vmatprep.subr.mxu1 %v1028_v43 }
 0x526   : > { %1495 = vmatpush3.msra.mxu1 %v1028_v43 }
 0x527   : > { %1496 = vmatprep.subr.mxu1 %v1027_v44 }
 0x528   : > { %1497 = vmatpush3.msra.mxu1 %v1027_v44  ;;  %v1024_v45 = vld [vmem:[#allocation3 + $0x8] sm:$0xff] }
 0x529   : > { %1499 = vmatmul.mubr.msk.f32.vlgmr.msra.gmra.mxu1 %vm674_vm2, %v1024_v45  ;;  %1504 = vmatprep.subr.mxu1 %v1142_v28 }
 0x52a   : > { %1505 = vmatpush3.msra.mxu1 %v1142_v28 }
 0x52b   : > { %1506 = vmatprep.subr.mxu1 %v1141_v29 }
 0x52c   : > { %1507 = vmatpush3.msra.mxu1 %v1141_v29 }
 0x52d   : > { %1508 = vmatprep.subr.mxu1 %v1140_v31 }
 0x52e   : > { %1509 = vmatpush3.msra.mxu1 %v1140_v31 }
 0x52f   : > { %1510 = vmatprep.subr.mxu1 %v1139_v32 }
 0x530   : > { %1511 = vmatpush3.msra.mxu1 %v1139_v32 }
 0x5e1   : > { %v865_v47 = vpop.f32.mrf.mxu1 }
 0x5e2   : > { %v870_v49 = vadd.f32 %v865_v47, %v530_v46 }
 0x5e3   : > { %v867_v50 = vpop.f32.mrf.mxu1 }
 0x5e4   : > { %v871_v51 = vadd.f32 %v867_v50, %v532_v48  ;;  %v872_v58 = vmul.f32 0.5, %v870_v49 }
 0x5e6   : > { %1660 = vtanh.f32 %v871_v51  ;;  %v873_v5 = vmul.f32 0.5, %v871_v51 }
 0x5e7   : > { %1662 = vtanh.f32 %v872_v58 }
 0x5e9   : > { %v1500_v53 = vpop.f32.mrf.mxu1 }
 0x5ea   : > { %v1122_v54 = vadd.f32 %v1500_v53, %v2381_v52 }
 0x5eb   : > { %v1116_v55 = vpop.f32.mrf.mxu1 }
 0x5ec   : > { %1241 = vst.msk [vmem:[%s2221_s23 + $0x8] sm:$0xff] %vm674_vm2, %v1122_v54  ;;  %v1117_v56 = vadd.f32 %v2381_v52, %v1116_v55 }
 0x5ee   : > { %1240 = vst.msk [vmem:[%s2221_s23] sm:$0xff] %vm674_vm2, %v1117_v56 }
 0x5f3   : > { %v1661_v57 = vpop.eup %1660 }
 0x5f4   : > { %883 = vrot.lane.b32.xlu1 %v1661_v57, %s1947_s20  ;;  %v1663_v59 = vpop.eup %1662 }
 0x5f5   : > { %v876_v60 = vmul.f32 0.5, %v1663_v59 }
 0x5f7   : > { %v878_v61 = vadd.f32 0.5, %v876_v60 }
 0x5f9   : > { %v881_v0 = vmul.f32 %v878_v61, %v779_v30 }
 0x666   : > { %v884_v62 = vpop.permute.xlu1 %883 }
 0x667   : > { %v886_v63 = vmul.f32 %v884_v62, %v878_v61 }
 0x669   : > { %888 = vrot.lane.b32.xlu0 %v886_v63, %s1947_s20 }
 0x6db   : > { %v889_v1 = vpop.permute.xlu0 %888 }
 0x6dc   : > { %v891_v2 = vadd.f32 %v889_v1, %v881_v0 }
 0x6de   : > { %1664 = vtanh.f32 %v891_v2 }
 0x6df   : > { %1666 = vtanh.f32 %v873_v5 }
 0x6eb   : > { %v1665_v3 = vpop.eup %1664 }
 0x6ec   : > { %894 = vrot.lane.b32.xlu1 %v1665_v3, %s1947_s20  ;;  %v1667_v7 = vpop.eup %1666 }
 0x6ed   : > { %v877_v9 = vmul.f32 0.5, %v1667_v7 }
 0x6ef   : > { %v879_v11 = vadd.f32 0.5, %v877_v9 }
 0x75e   : > { %v895_v4 = vpop.permute.xlu1 %894 }
 0x75f   : > { %v897_v6 = vmul.f32 %v895_v4, %v879_v11 }
 0x761   : > { %899 = vst.msk [vmem:[#allocation3 + $0x10] sm:$0xff] %vm674_vm2, %v897_v6  ;;  %1453 = vmatmul.mubr.msk.f32.vlgmr.msra.gmra.mxu0 %vm438_vm1, %v897_v6 }
 0x768   : > { %v1025_v8 = vld [vmem:[#allocation3 + $0x10] sm:$0xff] }
 0x769   : > { %1501 = vmatprep.mubr.msk.f32.mxu1 %vm674_vm2, %v1025_v8 }
 0x821   : > { %v977_v15 = vpop.f32.mrf.mxu0 }
 0x822   : > { %v982_v17 = vadd.f32 %v977_v15, %v536_v10 }
 0x823   : > { %v979_v18 = vpop.f32.mrf.mxu0 }
 0x824   : > { %v983_v19 = vadd.f32 %v979_v18, %v538_v16  ;;  %v984_v21 = vmul.f32 0.5, %v982_v17 }
 0x826   : > { %1668 = vtanh.f32 %v983_v19  ;;  %v985_v14 = vmul.f32 0.5, %v983_v19 }
 0x827   : > { %1670 = vtanh.f32 %v984_v21 }
 0x833   : > { %v1669_v20 = vpop.eup %1668 }
 0x834   : > { %995 = vrot.lane.b32.xlu0 %v1669_v20, %s1947_s20  ;;  %v1671_v22 = vpop.eup %1670 }
 0x835   : > { %v988_v23 = vmul.f32 0.5, %v1671_v22 }
 0x837   : > { %v990_v24 = vadd.f32 0.5, %v988_v23 }
 0x839   : > { %v993_v41 = vmul.f32 %v990_v24, %v891_v2 }
 0x8a6   : > { %v996_v25 = vpop.permute.xlu0 %995 }
 0x8a7   : > { %v998_v26 = vmul.f32 %v996_v25, %v990_v24 }
 0x8a9   : > { %1000 = vrot.lane.b32.xlu1 %v998_v26, %s1947_s20 }
 0x91b   : > { %v1001_v12 = vpop.permute.xlu1 %1000 }
 0x91c   : > { %v1003_v27 = vadd.f32 %v1001_v12, %v993_v41 }
 0x91e   : > { %1672 = vtanh.f32 %v1003_v27 }
 0x91f   : > { %1674 = vtanh.f32 %v985_v14 }
 0x92b   : > { %v1673_v42 = vpop.eup %1672 }
 0x92c   : > { %1006 = vrot.lane.b32.xlu0 %v1673_v42, %s1947_s20  ;;  %v1675_v30 = vpop.eup %1674 }
 0x92d   : > { %v989_v33 = vmul.f32 0.5, %v1675_v30 }
 0x92f   : > { %v991_v34 = vadd.f32 0.5, %v989_v33 }
 0x930   : > { %901 = vrot.lane.b32.xlu0 %v897_v6, %s1948_s1 }
 0x934   : > { %677 = vrot.lane.b32.xlu0 %v2337_v13, %s1948_s1 }
 0x99e   : > { %v1007_v35 = vpop.permute.xlu0 %1006 }
 0x99f   : > { %v1009_v36 = vmul.f32 %v1007_v35, %v991_v34 }
 0x9a1   : > { %1011 = vst.msk [vmem:[#allocation3 + $0x18] sm:$0xff] %vm674_vm2, %v1009_v36  ;;  %1013 = vrot.lane.b32.xlu1 %v1009_v36, %s1948_s1 }
 0x9a2   : > { %1017 = vst.msk [vmem:[#allocation5] sm:$0xff] %vm438_vm1, %v1009_v36  ;;  %v902_v13 = vpop.permute.xlu0 %901 }
 0x9a3   : > { %905 = vst.msk [vmem:[#allocation4 + $0x8] sm:$0xff] %vm674_vm2, %v902_v13 }
 0x9a5   : > { %789 = vrot.lane.b32.xlu1 %v2368_v38, %s1948_s1 }
 0x9a6   : > { %v678_v37 = vpop.permute.xlu0 %677 }
 0x9a7   : > { %681 = vst.msk [vmem:[#allocation4 + $0x18] sm:$0xff] %vm674_vm2, %v678_v37 }
 0x9a8   : > { %v1026_v39 = vld [vmem:[#allocation3 + $0x18] sm:$0xff] }
 0x9a9   : > { %1019 = vrot.lane.b32.xlu1 %v1003_v27, %s1947_s20  ;;  %1502 = vmatmul.mubr.msk.f32.gmra.mxu1 %vm674_vm2, %v1026_v39  ;;  %s1949_s20 = smov [#allocation16]  }
 0x9aa   : > { %v1136_v38 = vld [vmem:[#allocation4 + $0x8] sm:$0xff]  ;;  %s1812_s22 = sshll.u32 %s1949_s20, 4  ;;  %s1813_s22 = int_to_ptr.vmem [resolvable:$false] %s1812_s22 }
 0x9ab   : > { %s1814_s4 = scalar_lea.vmem %s1813_s22, 1024  ;;  %p1815_p12 = scmp.lt.s32.totalorder %s2425_s18, %s1813_s22 }
 0x9ac   : > { %p1816_p10 = scmp.lt.s32.totalorder %s1814_s4, %s1808_s3 }
 0x9ae   : > { %v1138_v47 = vld [vmem:[#allocation4 + $0x18] sm:$0xff]  ;;  %p1817_p3 = por %p1816_p10, %p1815_p12 }
 0x9b0   : > { %p1818_p5 = pnand %p1817_p3, %p1811_p11 }
 0xa13   : > { %v1014_v40 = vpop.permute.xlu1 %1013 }
 0xa14   : > { %1016 = vst.msk [vmem:[#allocation4] sm:$0xff] %vm674_vm2, %v1014_v40 }
 0xa17   : > { %v790_v43 = vpop.permute.xlu1 %789 }
 0xa18   : > { %793 = vst.msk [vmem:[#allocation4 + $0x10] sm:$0xff] %vm674_vm2, %v790_v43 }
 0xa1b   : > { %v1020_v44 = vpop.permute.xlu1 %1019  ;;  %v1135_v45 = vld [vmem:[#allocation4] sm:$0xff] }
 0xa1c   : > { %1022 = vst.msk [vmem:[#allocation6] sm:$0xff] %vm438_vm1, %v1020_v44  ;;  %1512 = vmatprep.mubr.msk.f32.mxu1 %vm674_vm2, %v1135_v45 }
 0xa1d   : > { %1513 = vmatmul.mubr.msk.f32.vlgmr.msra.gmra.mxu1 %vm674_vm2, %v1136_v38 }
 0xa1f   : > { %v1137_v46 = vld [vmem:[#allocation4 + $0x10] sm:$0xff] }
 0xa20   : > { %1515 = vmatprep.mubr.msk.f32.mxu1 %vm674_vm2, %v1137_v46 }
 0xa21   : > { %1516 = vmatmul.mubr.msk.f32.gmra.mxu1 %vm674_vm2, %v1138_v47 }
 0xa69   : > { %v1503_v48 = vpop.f32.mrf.mxu1 }
 0xa6a   : > { %v1132_v49 = vadd.f32 %v1503_v48, %v2381_v52 }
 0xa6b   : > { %v1126_v50 = vpop.f32.mrf.mxu1 }
 0xa6c   : > { %1243 = vst.msk [vmem:[%s2221_s23 + $0x18] sm:$0xff] %vm674_vm2, %v1132_v49  ;;  %v1127_v51 = vadd.f32 %v2381_v52, %v1126_v50 }
 0xa6e   : > { %1242 = vst.msk [vmem:[%s2221_s23 + $0x10] sm:$0xff] %vm674_vm2, %v1127_v51 }
 0xa6f   : > { %1821 = shalt.err (!%p1818_p5)
}
 0xa70   : > { %s1822_s23 = scalar_lea.hbm %s2423_s19, 512  ;;  %s1826_s13 = scalar_lea.hbm %s2539_s7, 1024 }
 0xa71   : > { %p1823_p4 = scmp.ne.s32.totalorder %s2423_s19, %s1822_s23  ;;  %p1827_p8 = scmp.lt.s32.totalorder %s2423_s19, %s2539_s7 }
 0xa72   : > { %p1828_p6 = scmp.lt.s32.totalorder %s1826_s13, %s1822_s23 }
 0xa73   : > { %p1824_p9 = pnand %p1823_p4, %p2588_p7 }
 0xa74   : > { %p1829_p1 = por %p1828_p6, %p1827_p8 }
 0xa75   : > { %p1825_p13 = pneg %p1824_p9 }
 0xa77   : > { %p1830_p0 = pnand %p1829_p1, %p1825_p13 }
 0xa79   : > { %1833 = shalt.err (!%p1830_p0)
}
 0xa7a   : > { %s1950_s3 = smov 128   ;;  %s1951_s22 = smov 8  }
 0xa7b   : > { %1536 = dma.vmem_to_hbm [thread:$0]  (%p2588_p7), %s2425_s18, 512, %s2423_s19, %s1249_s24, %s1950_s3, %s1950_s3, %s1951_s22  }
 0xa7c   : > { %s1277_s4 = ssub.s32 1, %s2034_s12  ;;  %s1284_s1 = sshll.u32 %s2223_s14, 4  ;;  %s2471_s1 = int_to_ptr.vmem [resolvable:$true] %s1284_s1 }
 0xa7d   : > { %s1473_s23 = sshll.u32 %s1277_s4, 9  ;;  %s1254_s12 = scalar_lea.sflag [#allocation18], %s392_s16 }
 0xa7e   : > { %s2469_s13 = scalar_lea.hbm %s2540_s8, %s1473_s23  ;;  %s1834_s27 = scalar_lea.vmem %s2471_s1, 512 }
 0xa7f   : > { %p1835_p7 = scmp.ne.s32.totalorder %s2471_s1, %s1834_s27  ;;  %p2589_p2 = scmp.ne.s32.totalorder %s2562_s17, 0 }
 0xa80   : > { %s1952_s18 = smov [#allocation17]  }
 0xa81   : > { %p1836_p11 = pnand %p1835_p7, %p2589_p2  ;;  %s1838_s19 = sshll.u32 %s1952_s18, 4  ;;  %s1839_s19 = int_to_ptr.vmem [resolvable:$false] %s1838_s19 }
 0xa82   : > { %s1840_s24 = scalar_lea.vmem %s1839_s19, 1024  ;;  %p1841_p10 = scmp.lt.s32.totalorder %s2471_s1, %s1839_s19 }
 0xa83   : > { %p1837_p12 = pneg %p1836_p11  ;;  %p1842_p3 = scmp.lt.s32.totalorder %s1840_s24, %s1834_s27 }
 0xa85   : > { %p1843_p5 = por %p1842_p3, %p1841_p10 }
 0xa87   : > { %p1844_p4 = pnand %p1843_p5, %p1837_p12 }
 0xadd   : > { %v1514_v52 = vpop.f32.mrf.mxu1 }
 0xade   : > { %1245 = vst.msk [vmem:[%s2223_s14 + $0x8] sm:$0xff] %vm674_vm2, %v1514_v52 }
 0xadf   : > { %v1221_v53 = vpop.f32.mrf.mxu1 }
 0xae0   : > { %1244 = vst.msk [vmem:[%s2223_s14] sm:$0xff] %vm674_vm2, %v1221_v53 }
 0xae1   : > { %v1517_v54 = vpop.f32.mrf.mxu1 }
 0xae2   : > { %1247 = vst.msk [vmem:[%s2223_s14 + $0x18] sm:$0xff] %vm674_vm2, %v1517_v54 }
 0xae3   : > { %v1231_v55 = vpop.f32.mrf.mxu1 }
 0xae4   : > { %1246 = vst.msk [vmem:[%s2223_s14 + $0x10] sm:$0xff] %vm674_vm2, %v1231_v55 }
 0xae5   : > { %1847 = shalt.err (!%p1844_p4)
}
 0xae6   : > { %s1848_s14 = scalar_lea.hbm %s2469_s13, 512  ;;  %s1852_s20 = scalar_lea.hbm %s2540_s8, 1024 }
 0xae7   : > { %p1849_p9 = scmp.ne.s32.totalorder %s2469_s13, %s1848_s14  ;;  %p1853_p6 = scmp.lt.s32.totalorder %s2469_s13, %s2540_s8 }
 0xae8   : > { %p1854_p1 = scmp.lt.s32.totalorder %s1852_s20, %s1848_s14 }
 0xae9   : > { %p1850_p13 = pnand %p1849_p9, %p2589_p2 }
 0xaea   : > { %p1855_p0 = por %p1854_p1, %p1853_p6 }
 0xaeb   : > { %p1851_p8 = pneg %p1850_p13 }
 0xaed   : > { %p1856_p7 = pnand %p1855_p0, %p1851_p8 }
 0xaef   : > { %1859 = shalt.err (!%p1856_p7)
}
 0xaf0   : > { %1537 = dma.vmem_to_hbm [thread:$0]  (%p2589_p2), %s2471_s1, 512, %s2469_s13, %s1254_s12, %s1950_s3, %s1950_s3, %s1951_s22  }
 0xaf1 PF: > { %s2590_s5 = sld [smem:[#allocation25_spill]]  ;;  %s1299_s15 = sand.u32 1, %s1922_s30  }
 0xaf2   : > { %p2592_p12 = scmp.ge.s32.totalorder %s1934_s11, 2  ;;  %s1300_s27 = scalar_lea.sflag [#allocation9], %s1299_s15 }
 0xaf7   : > { %p2591_p11 = scmp.ne.s32.totalorder %s2590_s5, 0 }
 0xaf9   : > { %p1558_p10 = pnand %p2592_p12, %p2591_p11 }
 0xafb   : > { %p1559_p3 = pneg %p1558_p10 }
 0xafd   : > { %1901 = dma.done.wait (%p1559_p3), %s1300_s27, 512  }
 0xafe   : > { %1903 = vsyncadd (%p1559_p3), %s1300_s27, 4294966784  ;;  %s2593_s18 = sld [smem:[#allocation24_spill]]  ;;  %p2596_p4 = pmov %p2592_p12 }
 0xaff   : > { %s2594_s17 = sld [smem:[#allocation26_spill]] }
 0xb04   : > { %s1308_s19 = sand.u32 1, %s2593_s18  }
 0xb05   : > { %p2595_p5 = scmp.ne.s32.totalorder %s2594_s17, 0  ;;  %s1309_s3 = scalar_lea.sflag [#allocation18], %s1308_s19 }
 0xb07   : > { %p1561_p9 = pnand %p2596_p4, %p2595_p5 }
 0xb09   : > { %p1562_p2 = pneg %p1561_p9 }
 0xb0b   : > { %1905 = dma.done.wait (%p1562_p2), %s1309_s3, 512  }
 0xb0c   : > { %1907 = vsyncadd (%p1562_p2), %s1309_s3, 4294966784  ;;  %s2597_s22 = sld [smem:[#allocation27_spill]]  ;;  %p27_p13 = scmp.ge.s32.totalorder %s2129_s26, 4  }
 0xb0d   : > { %s2598_s27 = smov %s1914_s28  ;;  %s2599_s28 = smov %s1918_s29 }
 0xb0e   : > { %s2600_s29 = smov %s2158_s21  ;;  %s2601_s30 = smov %s1926_s9 }
 0xb0f   : > { %s2602_s9 = smov %s1930_s10  ;;  %s2604_s11 = smov %s2129_s26 }
 0xb10   :  { %29 = sbr.rel (!%p27_p13) target bundleno = 16 (0x10), region = 139 }
 0xb12   : > { %s2603_s10 = smov %s2597_s22 }
 0xb15   :  { %1314 = vsyncpa [#allocation8], 1 }
 0xb16   :  { %1316 = vsyncpa [#allocation8 + $0x1], 1 }
 0xb17   :  { %1317 = vsyncpa [#allocation11], 1 }
 0xb18   :  { %1318 = vsyncpa [#allocation14], 1 }
 0xb19   :  { %1319 = vsyncpa [#allocation9], 1 }
 0xb1a   :  { %1321 = vsyncpa [#allocation9 + $0x1], 1 }
 0xb1b   :  { %1322 = vsyncpa [#allocation18], 1 }
 0xb1c   :  { %1324 = vsyncpa [#allocation18 + $0x1], 1 }

</bundles_post_ra>
